<compile_context>
chip_gen: v5e
topology: v5e:2x2
jax: 0.10.0
libtpu: 0.0.40
codegen_flags: <defaults>
</compile_context>

<pallas_src>
import jax
import jax.numpy as jnp
from jax.experimental import pallas as pl
from jax.experimental.pallas import tpu as pltpu

# layers_struc -> net_u = Linear(2,32)+Tanh, Linear(32,32)+Tanh, Linear(32,1)
LAYERS_STRUC = (2, 32, 32, 32, 1)
TB_DEFAULT = 1024  # batch tile (lanes); sweep 512-2048 for large N


def _round_up(x, m):
    return -(-x // m) * m


def pinn_kernel(scal_ref, xt_ref, *rest):
    # rest = (W0^T, b0, W1^T, b1, ..., WL^T, bL, out_ref)
    # Wk^T has shape (out, in); bk has shape (out, 1); out block is (1, 2, TB).
    n_lin = (len(rest) - 1) // 2
    w_refs = rest[0:2 * n_lin:2]
    b_refs = rest[1:2 * n_lin:2]
    out_ref = rest[-1]

    lb0, lb1 = scal_ref[0], scal_ref[1]
    ub0, ub1 = scal_ref[2], scal_ref[3]
    lam1 = scal_ref[4]
    lam2 = jnp.exp(scal_ref[5])

    xt = xt_ref[...]            # (2, TB)  row 0 = x, row 1 = t
    x = xt[0:1, :]              # (1, TB)
    t = xt[1:2, :]              # (1, TB)
    tb = x.shape[1]

    sx = 2.0 / (ub0 - lb0)
    st = 2.0 / (ub1 - lb1)
    xn = sx * (x - lb0) - 1.0
    tn = st * (t - lb1) - 1.0

    # ---- peeled first layer: Linear(2, h0) + Tanh with analytic input derivs
    w0 = w_refs[0][...]         # (h0, 2)
    b0 = b_refs[0][...]         # (h0, 1)
    wx = w0[:, 0:1]             # (h0, 1)
    wt = w0[:, 1:2]             # (h0, 1)
    a = wx * xn + wt * tn + b0  # (h0, TB)   outer-product broadcasts, no K=2 matmul
    ax = sx * wx                # (h0, 1)    d a / d x  (constant over batch)
    at = st * wt                # (h0, 1)    d a / d t
    h = jnp.tanh(a)
    s = 1.0 - h * h
    z = h                       # value
    zx = s * ax                 # d z / d x
    zt = s * at                 # d z / d t
    zxx = -2.0 * h * zx * ax    # d2 z / d x2   (axx == 0 for the first layer)

    # ---- middle hidden layers: Linear + Tanh, 4 derivative streams fused
    for k in range(1, n_lin - 1):
        w = w_refs[k][...]      # (out, in)
        b = b_refs[k][...]      # (out, 1)
        stacked = jnp.concatenate([z, zx, zxx, zt], axis=1)           # (in, 4*TB)
        y = jnp.dot(w, stacked, preferred_element_type=jnp.float32)   # (out, 4*TB)
        a = y[:, 0 * tb:1 * tb] + b
        ax = y[:, 1 * tb:2 * tb]
        axx = y[:, 2 * tb:3 * tb]
        at = y[:, 3 * tb:4 * tb]
        h = jnp.tanh(a)
        s = 1.0 - h * h
        z = h
        zt = s * at
        zx = s * ax
        zxx = s * axx - 2.0 * h * zx * ax

    # ---- last layer: Linear (no activation), fused over the 4 streams
    w = w_refs[-1][...]         # (1, in)
    b = b_refs[-1][...]         # (1, 1)
    stacked = jnp.concatenate([z, zx, zxx, zt], axis=1)               # (in, 4*TB)
    y = jnp.dot(w, stacked, preferred_element_type=jnp.float32)       # (1, 4*TB)
    u = y[:, 0 * tb:1 * tb] + b
    ux = y[:, 1 * tb:2 * tb]
    uxx = y[:, 2 * tb:3 * tb]
    ut = y[:, 3 * tb:4 * tb]

    f = ut + lam1 * u * ux - lam2 * uxx
    out_ref[...] = jnp.concatenate([u, f], axis=0)[None]              # (1, 2, TB)


def pinn_forward(x, t, params, lb, ub, lambdas, *, tb=TB_DEFAULT):
    """x, t: (N, 1) f32.  params: list of (W (in,out), b (1,out)).  Returns (u, f)."""
    n = x.shape[0]
    tb = max(128, _round_up(tb, 128))
    tb_eff = min(tb, _round_up(n, 128))           # multiple of 128
    n_pad = _round_up(n, tb_eff)
    n_tiles = n_pad // tb_eff

    # one pre-concatenated, zero-padded (2, N_pad) input: row 0 = x, row 1 = t
    xt = jnp.concatenate(
        [jnp.reshape(x, (1, n)), jnp.reshape(t, (1, n))], axis=0
    ).astype(jnp.float32)
    if n_pad != n:
        xt = jnp.pad(xt, ((0, 0), (0, n_pad - n)))

    # scalars = [lb0, lb1, ub0, ub1, lambda_1, lambda_2 (pre-exp)]
    scalars = jnp.concatenate([
        jnp.asarray(lb, jnp.float32).reshape(-1),
        jnp.asarray(ub, jnp.float32).reshape(-1),
        jnp.asarray(lambdas, jnp.float32).reshape(-1),
    ])

    flat_params = []
    in_specs = [
        pl.BlockSpec(memory_space=pltpu.SMEM),              # scalars (6,)
        pl.BlockSpec((2, tb_eff), lambda i: (0, i)),        # xt (2, N_pad)
    ]
    for w, b in params:
        wT = jnp.asarray(w, jnp.float32).T                  # (out, in)
        bT = jnp.asarray(b, jnp.float32).reshape(-1, 1)     # (out, 1)
        flat_params += [wT, bT]
        in_specs += [
            pl.BlockSpec(wT.shape, lambda i: (0, 0)),
            pl.BlockSpec(bT.shape, lambda i: (0, 0)),
        ]

    out = pl.pallas_call(
        pinn_kernel,
        grid=(n_tiles,),
        in_specs=in_specs,
        out_specs=pl.BlockSpec((1, 2, tb_eff), lambda i: (i, 0, 0)),
        out_shape=jax.ShapeDtypeStruct((n_tiles, 2, tb_eff), jnp.float32),
        compiler_params=pltpu.CompilerParams(dimension_semantics=("parallel",)),
    )(scalars, xt, *flat_params)

    u = out[:, 0, :].reshape(-1)[:n].reshape(n, 1)
    f = out[:, 1, :].reshape(-1)[:n].reshape(n, 1)
    return u, f


# ----------------------- pure-JAX reference (for checking) -----------------------
def _net_u(params, v):  # v: (2,)
    z = v
    for w, b in params[:-1]:
        z = jnp.tanh(z @ w + b[0])
    w, b = params[-1]
    return z @ w + b[0]  # (1,)


def _ref_forward_single(params, lb, ub, lam, xs, ts):
    def u_of(a, b_):
        xn = 2.0 * (a - lb[0]) / (ub[0] - lb[0]) - 1.0
        tn = 2.0 * (b_ - lb[1]) / (ub[1] - lb[1]) - 1.0
        return _net_u(params, jnp.stack([xn, tn]))[0]

    u = u_of(xs, ts)
    u_t = jax.grad(u_of, argnums=1)(xs, ts)
    u_x_fn = jax.grad(u_of, argnums=0)
    u_x = u_x_fn(xs, ts)
    u_xx = jax.grad(u_x_fn, argnums=0)(xs, ts)
    f = u_t + lam[0] * u * u_x - jnp.exp(lam[1]) * u_xx
    return u, f


if __name__ == "__main__":
    key = jax.random.PRNGKey(0)
    N = 1000  # collocation points (not a multiple of the tile -> exercises padding)

    # Burgers-style domain bounds: x in [-1, 1], t in [0, 0.99]
    lb = jnp.array([-1.0, 0.0], dtype=jnp.float32)
    ub = jnp.array([1.0, 0.99], dtype=jnp.float32)
    lambdas = jnp.array([0.0, -6.0], dtype=jnp.float32)  # lambda_1, lambda_2 (pre-exp)

    # deterministic parameter init (Linear layers: W stored as (in, out), b as (1, out))
    params = []
    dims = list(zip(LAYERS_STRUC[:-2], LAYERS_STRUC[1:-2])) + [(LAYERS_STRUC[-2], 1)]
    for (din, dout) in dims:
        key, kw, kb = jax.random.split(key, 3)
        bound = 1.0 / jnp.sqrt(jnp.float32(din))
        w = jax.random.uniform(kw, (din, dout), jnp.float32, -bound, bound)
        b = jax.random.uniform(kb, (1, dout), jnp.float32, -bound, bound)
        params.append((w, b))

    key, kx, kt = jax.random.split(key, 3)
    x = jax.random.uniform(kx, (N, 1), jnp.float32, lb[0], ub[0])
    t = jax.random.uniform(kt, (N, 1), jnp.float32, lb[1], ub[1])

    # tb=512 -> two parallel grid steps (keeps both TensorCores busy on v7x)
    u_out, f_out = jax.block_until_ready(
        pinn_forward(x, t, params, lb, ub, lambdas, tb=512)
    )

    # verify against jax.grad reference
    u_ref, f_ref = jax.vmap(
        lambda a, b_: _ref_forward_single(params, lb, ub, lambdas, a, b_)
    )(x[:, 0], t[:, 0])
    assert jnp.allclose(u_out[:, 0], u_ref, atol=1e-3, rtol=1e-3)
    assert jnp.allclose(f_out[:, 0], f_ref, atol=1e-3, rtol=1e-3)

    # TODO(synk): training loop / MSE loss (loss_fn, train) are host-side optimizer
    # logic and are intentionally not part of the kernel.
    print("KERNEL_OK")
</pallas_src>

<mosaic_0001>
module attributes {stable_mosaic.version = 11 : i64} {
  func.func @pinn_kernel(%arg0: i32, %arg1: memref<6xf32, #tpu.memory_space<smem>>, %arg2: memref<2x512xf32, #tpu.memory_space<vmem>>, %arg3: memref<32x2xf32, #tpu.memory_space<vmem>>, %arg4: memref<32x1xf32, #tpu.memory_space<vmem>>, %arg5: memref<32x32xf32, #tpu.memory_space<vmem>>, %arg6: memref<32x1xf32, #tpu.memory_space<vmem>>, %arg7: memref<1x32xf32, #tpu.memory_space<vmem>>, %arg8: memref<1x1xf32, #tpu.memory_space<vmem>>, %arg9: memref<1x2x512xf32, #tpu.memory_space<vmem>>) attributes {dimension_semantics = [#tpu.dimension_semantics<parallel>], iteration_bounds = array<i64: 2>, scalar_prefetch = 0 : i64, scratch_operands = 0 : i64, tpu.core_type = #tpu.core_type<tc>, window_params = [{transform_indices = @transform_0, window_bounds = array<i64: 6>}, {transform_indices = @transform_1, window_bounds = array<i64: 2, 512>}, {pipeline_mode = #tpu.pipeline_mode<synchronous>, transform_indices = @transform_2, window_bounds = array<i64: 32, 2>}, {pipeline_mode = #tpu.pipeline_mode<synchronous>, transform_indices = @transform_3, window_bounds = array<i64: 32, 1>}, {pipeline_mode = #tpu.pipeline_mode<synchronous>, transform_indices = @transform_4, window_bounds = array<i64: 32, 32>}, {pipeline_mode = #tpu.pipeline_mode<synchronous>, transform_indices = @transform_5, window_bounds = array<i64: 32, 1>}, {pipeline_mode = #tpu.pipeline_mode<synchronous>, transform_indices = @transform_6, window_bounds = array<i64: 1, 32>}, {pipeline_mode = #tpu.pipeline_mode<synchronous>, transform_indices = @transform_7, window_bounds = array<i64: 1, 1>}, {transform_indices = @transform_8, window_bounds = array<i64: 1, 2, 512>}]} {
    %c0 = arith.constant 0 : index
    %0 = memref.load %arg1[%c0] : memref<6xf32, #tpu.memory_space<smem>>
    %c1 = arith.constant 1 : index
    %1 = memref.load %arg1[%c1] : memref<6xf32, #tpu.memory_space<smem>>
    %c2 = arith.constant 2 : index
    %2 = memref.load %arg1[%c2] : memref<6xf32, #tpu.memory_space<smem>>
    %c3 = arith.constant 3 : index
    %3 = memref.load %arg1[%c3] : memref<6xf32, #tpu.memory_space<smem>>
    %c4 = arith.constant 4 : index
    %4 = memref.load %arg1[%c4] : memref<6xf32, #tpu.memory_space<smem>>
    %c5 = arith.constant 5 : index
    %5 = memref.load %arg1[%c5] : memref<6xf32, #tpu.memory_space<smem>>
    %6 = math.exp %5 : f32
    %c0_0 = arith.constant 0 : index
    %c0_1 = arith.constant 0 : index
    %7 = vector.load %arg2[%c0_0, %c0_1] : memref<2x512xf32, #tpu.memory_space<vmem>>, vector<2x512xf32>
    %8 = vector.extract_strided_slice %7 {offsets = [0, 0], sizes = [1, 512], strides = [1, 1]} : vector<2x512xf32> to vector<1x512xf32>
    %9 = vector.extract_strided_slice %7 {offsets = [1, 0], sizes = [1, 512], strides = [1, 1]} : vector<2x512xf32> to vector<1x512xf32>
    %10 = arith.subf %2, %0 : f32
    %cst = arith.constant 2.000000e+00 : f32
    %11 = arith.divf %cst, %10 : f32
    %12 = arith.subf %3, %1 : f32
    %cst_2 = arith.constant 2.000000e+00 : f32
    %13 = arith.divf %cst_2, %12 : f32
    %14 = vector.broadcast %0 : f32 to vector<1x512xf32>
    %15 = arith.subf %8, %14 : vector<1x512xf32>
    %16 = vector.broadcast %11 : f32 to vector<1x512xf32>
    %17 = arith.mulf %16, %15 : vector<1x512xf32>
    %cst_3 = arith.constant 1.000000e+00 : f32
    %18 = vector.broadcast %cst_3 : f32 to vector<1x512xf32>
    %19 = arith.subf %17, %18 : vector<1x512xf32>
    %20 = vector.broadcast %1 : f32 to vector<1x512xf32>
    %21 = arith.subf %9, %20 : vector<1x512xf32>
    %22 = vector.broadcast %13 : f32 to vector<1x512xf32>
    %23 = arith.mulf %22, %21 : vector<1x512xf32>
    %cst_4 = arith.constant 1.000000e+00 : f32
    %24 = vector.broadcast %cst_4 : f32 to vector<1x512xf32>
    %25 = arith.subf %23, %24 : vector<1x512xf32>
    %c0_5 = arith.constant 0 : index
    %c0_6 = arith.constant 0 : index
    %26 = vector.load %arg3[%c0_5, %c0_6] : memref<32x2xf32, #tpu.memory_space<vmem>>, vector<32x2xf32>
    %c0_7 = arith.constant 0 : index
    %c0_8 = arith.constant 0 : index
    %27 = vector.load %arg4[%c0_7, %c0_8] : memref<32x1xf32, #tpu.memory_space<vmem>>, vector<32x1xf32>
    %28 = vector.extract_strided_slice %26 {offsets = [0, 0], sizes = [32, 1], strides = [1, 1]} : vector<32x2xf32> to vector<32x1xf32>
    %29 = vector.extract_strided_slice %26 {offsets = [0, 1], sizes = [32, 1], strides = [1, 1]} : vector<32x2xf32> to vector<32x1xf32>
    %30 = vector.broadcast %28 : vector<32x1xf32> to vector<32x512xf32>
    %31 = vector.broadcast %19 : vector<1x512xf32> to vector<32x512xf32>
    %32 = arith.mulf %30, %31 : vector<32x512xf32>
    %33 = vector.broadcast %29 : vector<32x1xf32> to vector<32x512xf32>
    %34 = vector.broadcast %25 : vector<1x512xf32> to vector<32x512xf32>
    %35 = arith.mulf %33, %34 : vector<32x512xf32>
    %36 = arith.addf %32, %35 : vector<32x512xf32>
    %37 = vector.broadcast %27 : vector<32x1xf32> to vector<32x512xf32>
    %38 = arith.addf %36, %37 : vector<32x512xf32>
    %39 = vector.broadcast %11 : f32 to vector<32x1xf32>
    %40 = arith.mulf %39, %28 : vector<32x1xf32>
    %41 = vector.broadcast %13 : f32 to vector<32x1xf32>
    %42 = arith.mulf %41, %29 : vector<32x1xf32>
    %43 = math.tanh %38 : vector<32x512xf32>
    %44 = arith.mulf %43, %43 : vector<32x512xf32>
    %cst_9 = arith.constant 1.000000e+00 : f32
    %45 = vector.broadcast %cst_9 : f32 to vector<32x512xf32>
    %46 = arith.subf %45, %44 : vector<32x512xf32>
    %47 = vector.broadcast %40 : vector<32x1xf32> to vector<32x512xf32>
    %48 = arith.mulf %46, %47 : vector<32x512xf32>
    %49 = vector.broadcast %42 : vector<32x1xf32> to vector<32x512xf32>
    %50 = arith.mulf %46, %49 : vector<32x512xf32>
    %cst_10 = arith.constant -2.000000e+00 : f32
    %51 = vector.broadcast %cst_10 : f32 to vector<32x512xf32>
    %52 = arith.mulf %51, %43 : vector<32x512xf32>
    %53 = arith.mulf %52, %48 : vector<32x512xf32>
    %54 = vector.broadcast %40 : vector<32x1xf32> to vector<32x512xf32>
    %55 = arith.mulf %53, %54 : vector<32x512xf32>
    %c0_11 = arith.constant 0 : index
    %c0_12 = arith.constant 0 : index
    %56 = vector.load %arg5[%c0_11, %c0_12] : memref<32x32xf32, #tpu.memory_space<vmem>>, vector<32x32xf32>
    %c0_13 = arith.constant 0 : index
    %c0_14 = arith.constant 0 : index
    %57 = vector.load %arg6[%c0_13, %c0_14] : memref<32x1xf32, #tpu.memory_space<vmem>>, vector<32x1xf32>
    %58 = tpu.concatenate %43, %48, %55, %50 in 1 : vector<32x512xf32>, vector<32x512xf32>, vector<32x512xf32>, vector<32x512xf32> -> vector<32x2048xf32>
    %cst_15 = arith.constant dense<0.000000e+00> : vector<32x2048xf32>
    %59 = tpu.matmul %56, %58, %cst_15 {dimension_numbers = #tpu.dot_dimension_numbers<[1], [0], [0], [1], [0, 0, 1, 1], [], []>} : vector<32x32xf32>, vector<32x2048xf32>, vector<32x2048xf32> -> vector<32x2048xf32>
    %60 = vector.extract_strided_slice %59 {offsets = [0, 0], sizes = [32, 512], strides = [1, 1]} : vector<32x2048xf32> to vector<32x512xf32>
    %61 = vector.broadcast %57 : vector<32x1xf32> to vector<32x512xf32>
    %62 = arith.addf %60, %61 : vector<32x512xf32>
    %63 = vector.extract_strided_slice %59 {offsets = [0, 512], sizes = [32, 512], strides = [1, 1]} : vector<32x2048xf32> to vector<32x512xf32>
    %64 = vector.extract_strided_slice %59 {offsets = [0, 1024], sizes = [32, 512], strides = [1, 1]} : vector<32x2048xf32> to vector<32x512xf32>
    %65 = vector.extract_strided_slice %59 {offsets = [0, 1536], sizes = [32, 512], strides = [1, 1]} : vector<32x2048xf32> to vector<32x512xf32>
    %66 = math.tanh %62 : vector<32x512xf32>
    %67 = arith.mulf %66, %66 : vector<32x512xf32>
    %cst_16 = arith.constant 1.000000e+00 : f32
    %68 = vector.broadcast %cst_16 : f32 to vector<32x512xf32>
    %69 = arith.subf %68, %67 : vector<32x512xf32>
    %70 = arith.mulf %69, %65 : vector<32x512xf32>
    %71 = arith.mulf %69, %63 : vector<32x512xf32>
    %72 = arith.mulf %69, %64 : vector<32x512xf32>
    %cst_17 = arith.constant 2.000000e+00 : f32
    %73 = vector.broadcast %cst_17 : f32 to vector<32x512xf32>
    %74 = arith.mulf %73, %66 : vector<32x512xf32>
    %75 = arith.mulf %74, %71 : vector<32x512xf32>
    %76 = arith.mulf %75, %63 : vector<32x512xf32>
    %77 = arith.subf %72, %76 : vector<32x512xf32>
    %c0_18 = arith.constant 0 : index
    %c0_19 = arith.constant 0 : index
    %78 = vector.load %arg7[%c0_18, %c0_19] : memref<1x32xf32, #tpu.memory_space<vmem>>, vector<1x32xf32>
    %c0_20 = arith.constant 0 : index
    %c0_21 = arith.constant 0 : index
    %79 = vector.load %arg8[%c0_20, %c0_21] : memref<1x1xf32, #tpu.memory_space<vmem>>, vector<1x1xf32>
    %80 = tpu.concatenate %66, %71, %77, %70 in 1 : vector<32x512xf32>, vector<32x512xf32>, vector<32x512xf32>, vector<32x512xf32> -> vector<32x2048xf32>
    %cst_22 = arith.constant dense<0.000000e+00> : vector<1x2048xf32>
    %81 = tpu.matmul %78, %80, %cst_22 {dimension_numbers = #tpu.dot_dimension_numbers<[1], [0], [0], [1], [0, 0, 1, 1], [], []>} : vector<1x32xf32>, vector<32x2048xf32>, vector<1x2048xf32> -> vector<1x2048xf32>
    %82 = vector.extract_strided_slice %81 {offsets = [0, 0], sizes = [1, 512], strides = [1, 1]} : vector<1x2048xf32> to vector<1x512xf32>
    %83 = vector.broadcast %79 : vector<1x1xf32> to vector<1x512xf32>
    %84 = arith.addf %82, %83 : vector<1x512xf32>
    %85 = vector.extract_strided_slice %81 {offsets = [0, 512], sizes = [1, 512], strides = [1, 1]} : vector<1x2048xf32> to vector<1x512xf32>
    %86 = vector.extract_strided_slice %81 {offsets = [0, 1024], sizes = [1, 512], strides = [1, 1]} : vector<1x2048xf32> to vector<1x512xf32>
    %87 = vector.extract_strided_slice %81 {offsets = [0, 1536], sizes = [1, 512], strides = [1, 1]} : vector<1x2048xf32> to vector<1x512xf32>
    %88 = vector.broadcast %4 : f32 to vector<1x512xf32>
    %89 = arith.mulf %88, %84 : vector<1x512xf32>
    %90 = arith.mulf %89, %85 : vector<1x512xf32>
    %91 = arith.addf %87, %90 : vector<1x512xf32>
    %92 = vector.broadcast %6 : f32 to vector<1x512xf32>
    %93 = arith.mulf %92, %86 : vector<1x512xf32>
    %94 = arith.subf %91, %93 : vector<1x512xf32>
    %95 = tpu.concatenate %84, %94 in 0 : vector<1x512xf32>, vector<1x512xf32> -> vector<2x512xf32>
    %96 = vector.shape_cast %95 : vector<2x512xf32> to vector<1x2x512xf32>
    %c0_23 = arith.constant 0 : index
    %c0_24 = arith.constant 0 : index
    %c0_25 = arith.constant 0 : index
    %97 = vector.load %arg9[%c0_23, %c0_24, %c0_25] : memref<1x2x512xf32, #tpu.memory_space<vmem>>, vector<1x2x512xf32>
    tpu.vector_store %arg9[%c0_23, %c0_24, %c0_25], %96 {strides = array<i32>} : memref<1x2x512xf32, #tpu.memory_space<vmem>>, vector<1x2x512xf32>,
    return
  }
  func.func @transform_0(%arg0: i32) -> i32 {
    %c0_i32 = arith.constant 0 : i32
    %c0_i32_0 = arith.constant 0 : i32
    return %c0_i32 : i32
  }
  func.func @transform_1(%arg0: i32) -> (i32, i32) {
    %c0_i32 = arith.constant 0 : i32
    %c0_i32_0 = arith.constant 0 : i32
    return %c0_i32, %arg0 : i32, i32
  }
  func.func @transform_2(%arg0: i32) -> (i32, i32) {
    %c0_i32 = arith.constant 0 : i32
    %c0_i32_0 = arith.constant 0 : i32
    %c0_i32_1 = arith.constant 0 : i32
    return %c0_i32, %c0_i32_0 : i32, i32
  }
  func.func @transform_3(%arg0: i32) -> (i32, i32) {
    %c0_i32 = arith.constant 0 : i32
    %c0_i32_0 = arith.constant 0 : i32
    %c0_i32_1 = arith.constant 0 : i32
    return %c0_i32, %c0_i32_0 : i32, i32
  }
  func.func @transform_4(%arg0: i32) -> (i32, i32) {
    %c0_i32 = arith.constant 0 : i32
    %c0_i32_0 = arith.constant 0 : i32
    %c0_i32_1 = arith.constant 0 : i32
    return %c0_i32, %c0_i32_0 : i32, i32
  }
  func.func @transform_5(%arg0: i32) -> (i32, i32) {
    %c0_i32 = arith.constant 0 : i32
    %c0_i32_0 = arith.constant 0 : i32
    %c0_i32_1 = arith.constant 0 : i32
    return %c0_i32, %c0_i32_0 : i32, i32
  }
  func.func @transform_6(%arg0: i32) -> (i32, i32) {
    %c0_i32 = arith.constant 0 : i32
    %c0_i32_0 = arith.constant 0 : i32
    %c0_i32_1 = arith.constant 0 : i32
    return %c0_i32, %c0_i32_0 : i32, i32
  }
  func.func @transform_7(%arg0: i32) -> (i32, i32) {
    %c0_i32 = arith.constant 0 : i32
    %c0_i32_0 = arith.constant 0 : i32
    %c0_i32_1 = arith.constant 0 : i32
    return %c0_i32, %c0_i32_0 : i32, i32
  }
  func.func @transform_8(%arg0: i32) -> (i32, i32, i32) {
    %c0_i32 = arith.constant 0 : i32
    %c0_i32_0 = arith.constant 0 : i32
    %c0_i32_1 = arith.constant 0 : i32
    return %arg0, %c0_i32, %c0_i32_0 : i32, i32, i32
  }
}

</mosaic_0001>

<bundles_post_ra>
// kernel: tpu_custom_call.1
= control target key start
LH: loop header
LB: loop body
LE: loop exit
PB: predicated region body
PF: predicated region fallthrough
CT: control target
= control target key end

     0   :  { %s3181_s0 = inlined_call_operand.vmem [shape: f32[6], index: 0, kind: input, shape index: {}]   ;;  %s3182_s1 = inlined_call_operand.vmem [shape: f32[2,1024], index: 1, kind: input, shape index: {}]   ;;  %s3183_s2 = inlined_call_operand.vmem [shape: f32[32,2], index: 2, kind: input, shape index: {}]   ;;  %s3184_s3 = inlined_call_operand.vmem [shape: f32[32,1], index: 3, kind: input, shape index: {}]   ;;  %s3185_s4 = inlined_call_operand.vmem [shape: f32[32,32], index: 4, kind: input, shape index: {}]   ;;  %s3186_s5 = inlined_call_operand.vmem [shape: f32[32,1], index: 5, kind: input, shape index: {}]   ;;  %s3187_s6 = inlined_call_operand.vmem [shape: f32[1,32], index: 6, kind: input, shape index: {}]   ;;  %s3188_s7 = inlined_call_operand.<no memory space> [shape: f32[1,1], index: 7, kind: input, shape index: {}]   ;;  %s3189_s8 = inlined_call_operand.hbm [shape: f32[2,2,512], index: 8, kind: output, shape index: {}]  }
   0x1   :  { %v13_v0 = vstv %s3188_s7 }
   0x2   :  { %14 = vst [vmem:[#allocation2] sm:$0x1] %v13_v0 }
   0x3   :  { %15 = vsyncpa [#allocation5], 0 }
   0x4   :  { %16 = vsyncpa [#allocation4], 0 }
   0x5   :  { %18 = vsyncpa [#allocation4 + $0x1], 0  ;;  %s2246_s29 = smov 0   ;;  %s2248_s30 = smov 0  }
   0x6   :  { %s2250_s9 = smov 0   ;;  %s2252_s10 = smov 0  }
   0x7 LB: > { %s2267_s7 = sadd.s32 4294967295, %s2193_s10   ;;  %s1867_s11 = sadd.s32 4294967294, %s2193_s10   ;;  %s2193_s10 = sphi %s2252_s10, %s3286_s10   ;;  %s2189_s9 = sphi %s2250_s9, %s3285_s9   ;;  %s2185_s30 = sphi %s2248_s30, %s3284_s30   ;;  %s2181_s29 = sphi %s2246_s29, %s3283_s29  }
   0x8   : > { %s2271_s12 = sadd.s32 1, %s2193_s10   ;;  %s204_s13 = sadd.s32 1, %s2189_s9 }
   0x9   : > { %s201_s14 = ssub.s32 %s2193_s10, %s2271_s12  ;;  %p214_p0 = scmp.ne.s32.totalorder %s2189_s9, %s2185_s30 }
   0xa   : > { %p202_p1 = scmp.eq.s32.totalorder %s201_s14, 0  ;;  %p215_p2 = scmp.eq.s32.totalorder %s2267_s7, 1 }
   0xb   : > { %p220_p3 = scmp.ne.s32.totalorder %s2185_s30, %s2181_s29  ;;  %p221_p4 = scmp.eq.s32.totalorder %s1867_s11, 1 }
   0xc   : > { %s2282_s15 = scalar_select %p202_p1, %s2189_s9, %s204_s13  }
   0xd   : > { %p2284_p5 = por %p215_p2, %p214_p0  ;;  %p2288_p6 = por %p221_p4, %p220_p3 }
   0xe   : > { %p1868_p7 = scmp.ge.s32.totalorder %s2193_s10, 1  ;;  %p228_p8 = scmp.lt.s32.totalorder %s2193_s10, 3 }
   0xf   : > { %p1989_p9 = scmp.eq.s32.totalorder %s2267_s7, 0  ;;  %s240_s20 = sshll.u32 %s3181_s0, 4  ;;  %s241_s20 = int_to_ptr.vmem [resolvable:$true] %s240_s20 }
  0x10   : > { %p229_p10 = pnand %p1868_p7, %p228_p8  ;;  %s2195_s21 = smov [#allocation3]  }
  0x12   : > { %p1981_p11 = pneg %p229_p10  ;;  %280 = sbr.rel (%p229_p10) target bundleno = 618 (0x26a), region = 52 }
  0x14   : > { %p1982_p12 = pnand %p1989_p9, %p1981_p11 }
  0x16   : > { %1984 = dma.vmem_to_smem (!%p1982_p12), %s241_s20, 16, %s2195_s21, [#allocation5]  }
  0x17   : > { %2172 = dma.done.wait (%p1989_p9), [#allocation5], 16  }
  0x18   : > { %2174 = vsyncadd (%p1989_p9), [#allocation5], 4294967280 }
  0x19   : > { %287 = sfence }
  0x1a   : > { %v2301_v1 = vld [vmem:[%s3183_s2 + $0x18] sm:$0xff]  ;;  %v2306_v2 = vld [vmem:[%s3183_s2 + $0x10] sm:$0xff]  ;;  %v2311_v3 = vld [vmem:[%s3183_s2 + $0x8] sm:$0xff]  ;;  %v2196_v4 = vmov 0   ;;  %s1880_s28 = sld [smem:[#allocation3 + $0x5]]  ;;  %v2197_v7 = vmov 1  }
  0x1b   : > { %2031 = vset.pattern.permute.xlu2 %v2196_v4  ;;  %2029 = vset.pattern.permute.xlu1 %v2196_v4  ;;  %s2317_s11 = sld [smem:[#allocation3]]  ;;  %v2334_v11 = vld [vmem:[%s3183_s2] sm:$0xff]  ;;  %v386_v13 = vld [vmem:[%s3184_s3 + $0x18] sm:$0xff]  ;;  %v385_v28 = vld [vmem:[%s3184_s3 + $0x10] sm:$0xff]  ;;  %vm717_vm8 = vcmask 261120   ;;  %vm1759_vm9 = vcmask 1040384  }
  0x1c   : > { %2027 = vset.pattern.permute.xlu0 %v2196_v4  ;;  %399 = vperm.xlu1 %2029, %v2306_v2   ;;  %s1877_s13 = sld [smem:[#allocation3 + $0x2]]  ;;  %v383_v29 = vld [vmem:[%s3184_s3] sm:$0xff]  ;;  %v384_v32 = vld [vmem:[%s3184_s3 + $0x8] sm:$0xff]  ;;  %s1968_s23 = sshll.u32 %s2267_s7, 3  ;;  %vm1771_vm10 = vcmask 1041408   ;;  %vm1773_vm11 = vcmask 1045508  }
  0x1d   : > { %404 = vperm.xlu0 %2027, %v2301_v1   ;;  %394 = vperm.xlu2 %2031, %v2311_v3   ;;  %s2321_s14 = sld [smem:[#allocation3 + $0x1]]  ;;  %vm1775_vm12 = vcmask 1043456  }
  0x1e   : > { %s1878_s18 = sld [smem:[#allocation3 + $0x3]] }
  0x20   : > { %v328_v5 = vstv %s1880_s28 }
  0x21   : > { %v329_v6 = vmul.f32 1.442695, %v328_v5  ;;  %v369_v39 = vstv %s2317_s11 }
  0x22   : > { %s333_s19 = ssub.f32 %s1877_s13, %s2317_s11 }
  0x23   : > { %2042 = vpow2.f32 %v329_v6  ;;  %v374_v37 = vstv %s2321_s14 }
  0x24   : > { %2030 = vset.pattern.permute.xlu1 %v2197_v7  ;;  %v334_v8 = vstv %s333_s19  ;;  %s351_s20 = ssub.f32 %s1878_s18, %s2321_s14  ;;  %s1874_s19 = sshll.u32 %s2267_s7, 2 }
  0x25   : > { %2028 = vset.pattern.permute.xlu0 %v2197_v7  ;;  %2032 = vset.pattern.permute.xlu2 %v2197_v7  ;;  %2044 = vrcp.f32 %v334_v8  ;;  %vm340_vm0 = vweird.f32 %v334_v8  ;;  %v346_v16 = vand.u32 2147483648, %v334_v8  ;;  %v344_v18 = vand.u32 2147483647, %v334_v8  ;;  %p317_p13 = scmp.lt.s32.totalorder %s1874_s19, 7 }
  0x26   : > { %449 = vperm.xlu0 %2028, %v2301_v1   ;;  %445 = vperm.xlu1 %2030, %v2306_v2   ;;  %v352_v9 = vstv %s351_s20 }
  0x27   : > { %441 = vperm.xlu2 %2032, %v2311_v3   ;;  %2046 = vrcp.f32 %v352_v9  ;;  %vm358_vm2 = vweird.f32 %v352_v9  ;;  %v364_v20 = vand.u32 2147483648, %v352_v9  ;;  %v362_v23 = vand.u32 2147483647, %v352_v9  ;;  %s3288_s19 = smov (!%p317_p13, %s1874_s19), 7 }
  0x28   : > { %v347_v24 = vor.u32 1.1754944e-38, %v346_v16  ;;  %vm345_vm5 = vcmp.eq.f32.partialorder %v344_v18, 8.507059e+37  ;;  %s1875_s21 = sshll.u32 %s3288_s19, 1 }
  0x29   : > { %v2043_v10 = vpop.eup %2042  ;;  %v365_v27 = vor.u32 1.1754944e-38, %v364_v20  ;;  %vm363_vm7 = vcmp.eq.f32.partialorder %v362_v23, 8.507059e+37  ;;  %s320_s25 = scalar_lea.vmem %s3182_s1, %s1875_s21  ;;  %s1879_s21 = sld [smem:[#allocation3 + $0x4]] }
  0x2a   : > { %1969 = vpush %v2043_v10  ;;  %v332_v38 = vld [vmem:[%s320_s25] sm:$0xff] }
  0x2b   : > { %v2045_v12 = vpop.eup %2044  ;;  %v375_v43 = vsub.f32 %v332_v38, %v374_v37  ;;  %v370_v45 = vsub.f32 %v332_v38, %v369_v39 }
  0x2c   : > { %v336_v14 = vmul.f32 %v2045_v12, %v334_v8  ;;  %vm341_vm1 = vweird.f32 %v2045_v12 }
  0x2d   : > { %v2047_v15 = vpop.eup %2046  ;;  %vm342_vm4 = vmor %vm340_vm0, %vm341_vm1 }
  0x2e   : > { %2033 = vset.pattern.permute.xlu1 %v2196_v4  ;;  %437 = vperm.xlu0 %2028, %v2334_v11   ;;  %v337_v17 = vsub.f32 1.0, %v336_v14  ;;  %v354_v19 = vmul.f32 %v2047_v15, %v352_v9  ;;  %vm359_vm3 = vweird.f32 %v2047_v15 }
  0x2f   : > { %2034 = vset.pattern.permute.xlu2 %v2196_v4  ;;  %514 = vperm.xlu1 %2033, %v386_v13   ;;  %vm360_vm6 = vmor %vm358_vm2, %vm359_vm3 }
  0x30   : > { %389 = vperm.xlu2 %2034, %v2334_v11   ;;  %v338_v21 = vmul.f32 %v2045_v12, %v337_v17  ;;  %v355_v22 = vsub.f32 1.0, %v354_v19 }
  0x32   : > { %v339_v25 = vadd.f32 %v2045_v12, %v338_v21  ;;  %v356_v26 = vmul.f32 %v2047_v15, %v355_v22 }
  0x34   : > { %v343_v30 = vsel %vm342_vm4, %v2045_v12, %v339_v25  ;;  %v357_v31 = vadd.f32 %v2047_v15, %v356_v26 }
  0x35   : > { %v348_v33 = vsel %vm345_vm5, %v347_v24, %v343_v30 }
  0x36   : > { %2035 = vset.pattern.permute.xlu0 %v2196_v4  ;;  %1971 = vpush %v348_v33  ;;  %v361_v34 = vsel %vm360_vm6, %v2047_v15, %v357_v31 }
  0x37   : > { %509 = vperm.xlu1 %2033, %v385_v28   ;;  %499 = vperm.xlu0 %2035, %v383_v29   ;;  %v366_v35 = vsel %vm363_vm7, %v365_v27, %v361_v34 }
  0x38   : > { %504 = vperm.xlu2 %2034, %v384_v32   ;;  %1973 = vpush %v366_v35 }
  0x3f   : > { %2036 = vset.pattern.permute.xlu0 %v2197_v7 }
  0x5b   : > { %s2356_s20 = spop %1969 }
  0x67   : > { %s1972_s22 = spop %1971 }
  0x68   : > { %s350_s26 = smul.f32 2.0, %s1972_s22  ;;  %s313_s22 = sand.u32 1, %s2185_s30  }
  0x69   : > { %s1974_s27 = spop %1973  ;;  %s1780_s11 = scalar_lea.sflag [#allocation4], %s313_s22 }
  0x6a   : > { %v371_v36 = vstv %s350_s26  ;;  %s368_s28 = smul.f32 2.0, %s1974_s27  ;;  %s1791_s26 = scalar_lea.hbm %s3189_s8, %s1968_s23 }
  0x6b   : > { %v536_v40 = vmul.f32 %v2301_v1, %v371_v36  ;;  %v535_v41 = vmul.f32 %v2306_v2, %v371_v36  ;;  %v372_v47 = vmul.f32 %v371_v36, %v370_v45  ;;  %v534_v48 = vmul.f32 %v2311_v3, %v371_v36 }
  0x6c   : > { %v376_v42 = vstv %s368_s28  ;;  %v533_v49 = vmul.f32 %v2334_v11, %v371_v36  ;;  %s1795_s28 = sshll.u32 %s1791_s26, 4  ;;  %s1796_s28 = int_to_ptr.hbm [resolvable:$true] %s1795_s28 }
  0x6d   : > { %v540_v44 = vmul.f32 %v2301_v1, %v376_v42  ;;  %606 = vperm.xlu1 %2033, %v536_v40   ;;  %601 = vperm.xlu2 %2034, %v535_v41   ;;  %v377_v46 = vmul.f32 %v376_v42, %v375_v43  ;;  %v1881_v51 = vadd.f32 -1.0, %v372_v47  ;;  %v539_v53 = vmul.f32 %v2306_v2, %v376_v42  ;;  %s2141_s14 = sshra.s32 %s1796_s28, 4  ;;  %s2142_s14 = int_to_ptr.hbm [resolvable:$true] %s2141_s14 }
  0x6e   : > { %v538_v54 = vmul.f32 %v2311_v3, %v376_v42  ;;  %s2143_s13 = scalar_lea.hbm %s2142_s14, 8  ;;  %p2148_p3 = scmp.lt.s32.totalorder %s2142_s14, %s3189_s8 }
  0x6f   : > { %642 = vperm.xlu0 %2036, %v540_v44   ;;  %v1882_v50 = vadd.f32 -1.0, %v377_v46  ;;  %v408_v59 = vperm.slane %v1881_v51, 0  ;;  %v409_v60 = vperm.slane %v1881_v51, 2  ;;  %v410_v61 = vperm.slane %v1881_v51, 4  ;;  %p2144_p0 = scmp.ne.s32.totalorder %s2142_s14, %s2143_s13 }
  0x70   : > { %v411_v62 = vperm.slane %v1881_v51, 6 }
  0x71   : > { %v453_v55 = vperm.slane %v1882_v50, 1  ;;  %v454_v56 = vperm.slane %v1882_v50, 3  ;;  %v455_v57 = vperm.slane %v1882_v50, 5  ;;  %v456_v58 = vperm.slane %v1882_v50, 7  ;;  %p2145_p1 = pnand %p2144_p0, %p2284_p5 }
  0x72   : > { %v416_v6 = vperm.slane %v408_v59, 0  ;;  %v417_v2 = vperm.slane %v409_v60, 0  ;;  %v418_v8 = vperm.slane %v410_v61, 0  ;;  %v419_v3 = vperm.slane %v411_v62, 0 }
  0x73   : > { %v461_v63 = vperm.slane %v453_v55, 1  ;;  %v462_v0 = vperm.slane %v454_v56, 1  ;;  %v463_v1 = vperm.slane %v455_v57, 1  ;;  %v464_v5 = vperm.slane %v456_v58, 1  ;;  %p2146_p2 = pneg %p2145_p1 }
  0x75   : > { %596 = vperm.xlu1 %2033, %v534_v48   ;;  %591 = vperm.xlu2 %2034, %v533_v49  }
  0x77   : > { %v395_v52 = vpop.permute.xlu2 %394  ;;  %2040 = vset.pattern.permute.xlu0 %v2196_v4 }
  0x78   : > { %v424_v9 = vmul.f32 %v416_v6, %v395_v52  ;;  %v425_v10 = vmul.f32 %v417_v2, %v395_v52  ;;  %v426_v12 = vmul.f32 %v418_v8, %v395_v52  ;;  %v427_v13 = vmul.f32 %v419_v3, %v395_v52 }
  0x7d   : > { %2037 = vset.pattern.permute.xlu1 %v2197_v7  ;;  %2038 = vset.pattern.permute.xlu2 %v2197_v7  ;;  %v537_v7 = vmul.f32 %v2334_v11, %v376_v42 }
  0x7e   : > { %637 = vperm.xlu1 %2037, %v539_v53   ;;  %632 = vperm.xlu2 %2038, %v538_v54  }
  0x81   : > { %v442_v14 = vpop.permute.xlu2 %441 }
  0x82   : > { %v469_v15 = vmul.f32 %v461_v63, %v442_v14  ;;  %v470_v16 = vmul.f32 %v462_v0, %v442_v14  ;;  %v471_v17 = vmul.f32 %v463_v1, %v442_v14  ;;  %v472_v18 = vmul.f32 %v464_v5, %v442_v14 }
  0x84   : > { %v485_v19 = vadd.f32 %v469_v15, %v424_v9  ;;  %v486_v20 = vadd.f32 %v470_v16, %v425_v10  ;;  %v487_v21 = vadd.f32 %v471_v17, %v426_v12  ;;  %v488_v22 = vadd.f32 %v472_v18, %v427_v13 }
  0x86   : > { %627 = vperm.xlu1 %2037, %v537_v7   ;;  %2039 = vset.pattern.permute.xlu2 %v2196_v4 }
  0x8a   : > { %v390_v25 = vpop.permute.xlu2 %389 }
  0x8b   : > { %v420_v50 = vmul.f32 %v416_v6, %v390_v25  ;;  %v421_v51 = vmul.f32 %v417_v2, %v390_v25  ;;  %v422_v52 = vmul.f32 %v418_v8, %v390_v25  ;;  %v423_v53 = vmul.f32 %v419_v3, %v390_v25 }
  0x8e   : > { %v400_v23 = vpop.permute.xlu1 %399  ;;  %2041 = vset.pattern.permute.xlu1 %v2196_v4 }
  0x8f   : > { %v405_v24 = vpop.permute.xlu0 %404  ;;  %v428_v26 = vmul.f32 %v416_v6, %v400_v23  ;;  %v429_v27 = vmul.f32 %v417_v2, %v400_v23  ;;  %v430_v28 = vmul.f32 %v418_v8, %v400_v23  ;;  %v431_v29 = vmul.f32 %v419_v3, %v400_v23 }
  0x90   : > { %v432_v30 = vmul.f32 %v416_v6, %v405_v24  ;;  %v433_v31 = vmul.f32 %v417_v2, %v405_v24  ;;  %v434_v32 = vmul.f32 %v418_v8, %v405_v24  ;;  %v435_v11 = vmul.f32 %v419_v3, %v405_v24 }
  0x92   : > { %v505_v55 = vpop.permute.xlu2 %504 }
  0x93   : > { %v521_v16 = vadd.f32 %v505_v55, %v485_v19  ;;  %v522_v6 = vadd.f32 %v505_v55, %v486_v20  ;;  %v523_v2 = vadd.f32 %v505_v55, %v487_v21  ;;  %v524_v8 = vadd.f32 %v505_v55, %v488_v22 }
  0x98   : > { %v450_v33 = vpop.permute.xlu0 %449  ;;  %v446_v34 = vpop.permute.xlu1 %445 }
  0x99   : > { %v477_v35 = vmul.f32 %v461_v63, %v450_v33  ;;  %v478_v36 = vmul.f32 %v462_v0, %v450_v33  ;;  %v479_v37 = vmul.f32 %v463_v1, %v450_v33  ;;  %v480_v38 = vmul.f32 %v464_v5, %v450_v33  ;;  %v2410_v33 = vld [vmem:[%s3185_s4] sm:$0xff] }
  0x9a   : > { %v473_v39 = vmul.f32 %v461_v63, %v446_v34  ;;  %v474_v40 = vmul.f32 %v462_v0, %v446_v34  ;;  %v475_v41 = vmul.f32 %v463_v1, %v446_v34  ;;  %v476_v42 = vmul.f32 %v464_v5, %v446_v34 }
  0x9b   : > { %v493_v4 = vadd.f32 %v477_v35, %v432_v30  ;;  %v494_v43 = vadd.f32 %v478_v36, %v433_v31  ;;  %v495_v44 = vadd.f32 %v479_v37, %v434_v32  ;;  %v496_v45 = vadd.f32 %v480_v38, %v435_v11  ;;  %v715_v37 = vld [vmem:[%s3186_s5 + $0x10] sm:$0xff]  ;;  %v2437_v38 = vld [vmem:[%s3185_s4 + $0x8] sm:$0xff] }
  0x9c   : > { %v489_v46 = vadd.f32 %v473_v39, %v428_v26  ;;  %v490_v47 = vadd.f32 %v474_v40, %v429_v27  ;;  %v491_v48 = vadd.f32 %v475_v41, %v430_v28  ;;  %v492_v49 = vadd.f32 %v476_v42, %v431_v29  ;;  %1206 = vperm.xlu0 %2040, %v715_v37   ;;  %v714_v39 = vld [vmem:[%s3186_s5 + $0x8] sm:$0xff]  ;;  %v2455_v41 = vld [vmem:[%s3185_s4 + $0x10] sm:$0xff] }
  0x9d   : > { %1201 = vperm.xlu1 %2041, %v714_v39  }
  0xa0   : > { %v438_v54 = vpop.permute.xlu0 %437 }
  0xa1   : > { %v465_v56 = vmul.f32 %v461_v63, %v438_v54  ;;  %v466_v57 = vmul.f32 %v462_v0, %v438_v54  ;;  %v467_v58 = vmul.f32 %v463_v1, %v438_v54  ;;  %v468_v59 = vmul.f32 %v464_v5, %v438_v54  ;;  %v515_v60 = vpop.permute.xlu1 %514 }
  0xa2   : > { %v529_v61 = vadd.f32 %v515_v60, %v493_v4  ;;  %v530_v62 = vadd.f32 %v515_v60, %v494_v43  ;;  %v531_v9 = vadd.f32 %v515_v60, %v495_v44  ;;  %v532_v10 = vadd.f32 %v515_v60, %v496_v45 }
  0xa3   : > { %v481_v12 = vadd.f32 %v465_v56, %v420_v50  ;;  %v482_v13 = vadd.f32 %v466_v57, %v421_v51  ;;  %v483_v14 = vadd.f32 %v467_v58, %v422_v52  ;;  %v484_v15 = vadd.f32 %v468_v59, %v423_v53  ;;  %v716_v53 = vld [vmem:[%s3186_s5 + $0x18] sm:$0xff]  ;;  %v713_v59 = vld [vmem:[%s3186_s5] sm:$0xff] }
  0xa4   : > { %2048 = vtanh.f32 %v529_v61  ;;  %1211 = vperm.xlu2 %2039, %v716_v53  }
  0xa5   : > { %2050 = vtanh.f32 %v530_v62 }
  0xa6   : > { %2052 = vtanh.f32 %v531_v9 }
  0xa7   : > { %2054 = vtanh.f32 %v532_v10 }
  0xa8   : > { %2056 = vtanh.f32 %v521_v16 }
  0xa9   : > { %2058 = vtanh.f32 %v522_v6  ;;  %v510_v63 = vpop.permute.xlu1 %509  ;;  %v500_v0 = vpop.permute.xlu0 %499 }
  0xaa   : > { %v2376_v1 = vpop.eup %2048  ;;  %2060 = vtanh.f32 %v523_v2  ;;  %v525_v5 = vadd.f32 %v510_v63, %v489_v46  ;;  %v526_v3 = vadd.f32 %v510_v63, %v490_v47  ;;  %v527_v17 = vadd.f32 %v510_v63, %v491_v48  ;;  %v2478_v47 = vld [vmem:[%s3185_s4 + $0x18] sm:$0xff] }
  0xab   : > { %v2378_v18 = vpop.eup %2050  ;;  %2062 = vtanh.f32 %v524_v8  ;;  %v528_v7 = vadd.f32 %v510_v63, %v492_v49  ;;  %742 = vmatpush.msra.mxu0 %v2376_v1  ;;  %v517_v20 = vadd.f32 %v500_v0, %v481_v12  ;;  %v518_v22 = vadd.f32 %v500_v0, %v482_v13 }
  0xac   : > { %v2381_v19 = vpop.eup %2052  ;;  %2064 = vtanh.f32 %v525_v5  ;;  %771 = vmatpush.msra.mxu1 %v2378_v18  ;;  %v519_v24 = vadd.f32 %v500_v0, %v483_v14  ;;  %v520_v26 = vadd.f32 %v500_v0, %v484_v15  ;;  %v2504_v54 = vmul.f32 %v2376_v1, %v2376_v1  ;;  %1196 = vperm.xlu2 %2039, %v713_v59  }
  0xad   : > { %v2384_v21 = vpop.eup %2054  ;;  %2066 = vtanh.f32 %v526_v3  ;;  %800 = vmatpush.msra.mxu2 %v2381_v19  ;;  %v2508_v55 = vmul.f32 %v2378_v18, %v2378_v18  ;;  %v2512_v56 = vmul.f32 %v2381_v19, %v2381_v19  ;;  %v673_v16 = vmul.f32 -2.0, %v2376_v1 }
  0xae   : > { %v2387_v23 = vpop.eup %2056  ;;  %2068 = vtanh.f32 %v527_v17  ;;  %829 = vmatpush.msra.mxu3 %v2384_v21  ;;  %v2516_v57 = vmul.f32 %v2384_v21, %v2384_v21  ;;  %v585_v60 = vsub.f32 1.0, %v2504_v54  ;;  %v674_v6 = vmul.f32 -2.0, %v2378_v18 }
  0xaf   : > { %v2390_v25 = vpop.eup %2058  ;;  %2070 = vtanh.f32 %v528_v7  ;;  %v2520_v58 = vmul.f32 %v2387_v23, %v2387_v23  ;;  %v586_v10 = vsub.f32 1.0, %v2508_v55  ;;  %v587_v12 = vsub.f32 1.0, %v2512_v56 }
  0xb0   : > { %v2392_v27 = vpop.eup %2060  ;;  %2072 = vtanh.f32 %v517_v20  ;;  %v2536_v9 = vmul.f32 %v2390_v25, %v2390_v25  ;;  %v588_v13 = vsub.f32 1.0, %v2516_v57  ;;  %v675_v3 = vmul.f32 -2.0, %v2381_v19 }
  0xb1   : > { %v2394_v28 = vpop.eup %2062  ;;  %2074 = vtanh.f32 %v518_v22  ;;  %v2551_v2 = vmul.f32 %v2392_v27, %v2392_v27  ;;  %v676_v17 = vmul.f32 -2.0, %v2384_v21  ;;  %v3230_v57 = vsub.f32 1.0, %v2520_v58 }
  0xb2   : > { %v2065_v29 = vpop.eup %2064  ;;  %2076 = vtanh.f32 %v519_v24  ;;  %v2555_v8 = vmul.f32 %v2394_v28, %v2394_v28  ;;  %v3193_v53 = vsub.f32 1.0, %v2536_v9 }
  0xb3   : > { %v2396_v30 = vpop.eup %2066  ;;  %2078 = vtanh.f32 %v520_v26  ;;  %743 = vmatpush.msra.mxu0 %v2065_v29  ;;  %v2450_v40 = vmul.f32 %v2065_v29, %v2065_v29  ;;  %v669_v44 = vmul.f32 -2.0, %v2065_v29 }
  0xb4   : > { %v2398_v31 = vpop.eup %2068  ;;  %772 = vmatpush.msra.mxu1 %v2396_v30  ;;  %v2528_v61 = vmul.f32 %v2396_v30, %v2396_v30  ;;  %v3196_v59 = vsub.f32 1.0, %v2555_v8 }
  0xb5   : > { %v2401_v32 = vpop.eup %2070  ;;  %801 = vmatpush.msra.mxu2 %v2398_v31  ;;  %744 = vmatpush.msra.mxu0 %v2387_v23  ;;  %v581_v42 = vsub.f32 1.0, %v2450_v40  ;;  %v2532_v62 = vmul.f32 %v2398_v31, %v2398_v31  ;;  %v3233_v40 = vsub.f32 1.0, %v2536_v9 }
  0xb6   : > { %v2073_v11 = vpop.eup %2072  ;;  %830 = vmatpush.msra.mxu3 %v2401_v32  ;;  %773 = vmatpush.msra.mxu1 %v2390_v25  ;;  %v2543_v14 = vmul.f32 %v2401_v32, %v2401_v32  ;;  %v3198_v18 = vsub.f32 1.0, %v2528_v61  ;;  %v3229_v55 = vsub.f32 1.0, %v2528_v61 }
  0xb7   : > { %v2412_v34 = vpop.eup %2074  ;;  %802 = vmatpush.msra.mxu2 %v2392_v27  ;;  %745 = vmatpush.msra.mxu0 %v2073_v11  ;;  %v2473_v46 = vmul.f32 %v2073_v11, %v2073_v11  ;;  %v661_v51 = vmul.f32 -2.0, %v2073_v11  ;;  %v3192_v7 = vsub.f32 1.0, %v2532_v62 }
  0xb8   : > { %v2415_v35 = vpop.eup %2076  ;;  %831 = vmatpush.msra.mxu3 %v2394_v28  ;;  %774 = vmatpush.msra.mxu1 %v2412_v34  ;;  %v3191_v24 = vsub.f32 1.0, %v2543_v14  ;;  %v2576_v26 = vmul.f32 %v2412_v34, %v2412_v34 }
  0xb9   : > { %v2419_v36 = vpop.eup %2078  ;;  %803 = vmatpush.msra.mxu2 %v2415_v35  ;;  %1883 = vmatmul.msk.f32.vlgmr.msra.gmra.mxu0 %vm717_vm8, %v2410_v33  ;;  %v3190_v48 = vsub.f32 1.0, %v2473_v46  ;;  %v2589_v39 = vmul.f32 %v2415_v35, %v2415_v35 }
  0xba   : > { %832 = vmatpush.msra.mxu3 %v2419_v36  ;;  %1887 = vmatmul.msk.f32.vlgmr.msra.gmra.mxu1 %vm717_vm8, %v2410_v33 }
  0xbb   : > { %1891 = vmatmul.msk.f32.vlgmr.msra.gmra.mxu2 %vm717_vm8, %v2410_v33  ;;  %1895 = vmatmul.msk.f32.vlgmr.msra.gmra.mxu3 %vm717_vm8, %v2410_v33 }
  0xc1   : > { %1884 = vmatmul.msk.f32.gmra.mxu0 %vm717_vm8, %v2437_v38 }
  0xc2   : > { %1888 = vmatmul.msk.f32.gmra.mxu1 %vm717_vm8, %v2437_v38 }
  0xc3   : > { %1892 = vmatmul.msk.f32.gmra.mxu2 %vm717_vm8, %v2437_v38  ;;  %1896 = vmatmul.msk.f32.gmra.mxu3 %vm717_vm8, %v2437_v38 }
  0xc7   : > { %v2458_v4 = vpop.permute.xlu2 %601 }
  0xc8   : > { %v617_v43 = vmul.f32 %v2458_v4, %v581_v42  ;;  %v618_v19 = vmul.f32 %v2458_v4, %v3198_v18  ;;  %v619_v21 = vmul.f32 %v2458_v4, %v3192_v7  ;;  %v620_v37 = vmul.f32 %v2458_v4, %v3191_v24 }
  0xc9   : > { %1885 = vmatmul.msk.f32.gmra.mxu0 %vm717_vm8, %v2455_v41  ;;  %v671_v24 = vmul.f32 -2.0, %v2398_v31  ;;  %v662_v18 = vmul.f32 -2.0, %v2412_v34 }
  0xca   : > { %1889 = vmatmul.msk.f32.gmra.mxu1 %vm717_vm8, %v2455_v41  ;;  %v2471_v45 = vmul.f32 %v669_v44, %v617_v43  ;;  %v2593_v44 = vmul.f32 %v2419_v36, %v2419_v36 }
  0xcb   : > { %1893 = vmatmul.msk.f32.gmra.mxu2 %vm717_vm8, %v2455_v41  ;;  %1897 = vmatmul.msk.f32.gmra.mxu3 %vm717_vm8, %v2455_v41 }
  0xcf   : > { %v2481_v49 = vpop.permute.xlu2 %591 }
  0xd0   : > { %v2488_v50 = vmul.f32 %v2481_v49, %v3190_v48  ;;  %v670_v48 = vmul.f32 -2.0, %v2396_v30 }
  0xd1   : > { %1886 = vmatmul.msk.f32.gmra.mxu0 %vm717_vm8, %v2478_v47 }
  0xd2   : > { %1890 = vmatmul.msk.f32.gmra.mxu1 %vm717_vm8, %v2478_v47  ;;  %v2497_v52 = vmul.f32 %v661_v51, %v2488_v50  ;;  %v3195_v51 = vsub.f32 1.0, %v2520_v58  ;;  %v686_v31 = vmul.f32 %v670_v48, %v618_v19  ;;  %v3234_v58 = vsub.f32 1.0, %v2551_v2 }
  0xd3   : > { %1894 = vmatmul.msk.f32.gmra.mxu2 %vm717_vm8, %v2478_v47  ;;  %1898 = vmatmul.msk.f32.gmra.mxu3 %vm717_vm8, %v2478_v47 }
  0xdf   : > { %v2545_v15 = vpop.permute.xlu1 %606 }
  0xe0   : > { %v621_v63 = vmul.f32 %v2545_v15, %v585_v60  ;;  %v622_v0 = vmul.f32 %v2545_v15, %v586_v10  ;;  %v623_v1 = vmul.f32 %v2545_v15, %v587_v12  ;;  %v624_v5 = vmul.f32 %v2545_v15, %v588_v13 }
  0xe2   : > { %v689_v20 = vmul.f32 %v673_v16, %v621_v63  ;;  %858 = vmatpush.msrb.mxu0 %v621_v63  ;;  %v690_v22 = vmul.f32 %v674_v6, %v622_v0  ;;  %887 = vmatpush.msrb.mxu1 %v622_v0  ;;  %v691_v29 = vmul.f32 %v675_v3, %v623_v1  ;;  %v665_v6 = vmul.f32 -2.0, %v2387_v23 }
  0xe3   : > { %916 = vmatpush.msrb.mxu2 %v623_v1  ;;  %v692_v11 = vmul.f32 %v676_v17, %v624_v5  ;;  %945 = vmatpush.msrb.mxu3 %v624_v5  ;;  %v3197_v63 = vsub.f32 1.0, %v2576_v26  ;;  %v3199_v23 = vsub.f32 1.0, %v2589_v39  ;;  %v576_v17 = vsub.f32 1.0, %v2593_v44 }
  0xe4   : > { %859 = vmatpush.msrb.mxu0 %v617_v43  ;;  %888 = vmatpush.msrb.mxu1 %v618_v19  ;;  %v3194_v43 = vsub.f32 1.0, %v2551_v2  ;;  %v706_v48 = vmul.f32 %v690_v22, %v2545_v15  ;;  %v664_v19 = vmul.f32 -2.0, %v2419_v36 }
  0xe5   : > { %917 = vmatpush.msrb.mxu2 %v619_v21  ;;  %946 = vmatpush.msrb.mxu3 %v620_v37  ;;  %v612_v30 = vmul.f32 %v2481_v49, %v576_v17  ;;  %v708_v34 = vmul.f32 %v692_v11, %v2545_v15 }
  0xe7   : > { %v2599_v16 = vpop.permute.xlu1 %596 }
  0xe8   : > { %v613_v0 = vmul.f32 %v2599_v16, %v3195_v51  ;;  %v614_v1 = vmul.f32 %v2599_v16, %v3193_v53  ;;  %v615_v5 = vmul.f32 %v2599_v16, %v3194_v43  ;;  %v616_v3 = vmul.f32 %v2599_v16, %v3196_v59 }
  0xe9   : > { %v610_v53 = vmul.f32 %v2481_v49, %v3197_v63  ;;  %v672_v43 = vmul.f32 -2.0, %v2401_v32  ;;  %v666_v51 = vmul.f32 -2.0, %v2390_v25  ;;  %v611_v59 = vmul.f32 %v2481_v49, %v3199_v23 }
  0xea   : > { %v681_v7 = vmul.f32 %v665_v6, %v613_v0  ;;  %860 = vmatpush.msrb.mxu0 %v613_v0  ;;  %889 = vmatpush.msrb.mxu1 %v614_v1  ;;  %v687_v6 = vmul.f32 %v671_v24, %v619_v21  ;;  %v667_v0 = vmul.f32 -2.0, %v2392_v27  ;;  %v668_v63 = vmul.f32 -2.0, %v2394_v28 }
  0xeb   : > { %918 = vmatpush.msrb.mxu2 %v615_v5  ;;  %947 = vmatpush.msrb.mxu3 %v616_v3  ;;  %v705_v25 = vmul.f32 %v689_v20, %v2545_v15  ;;  %v688_v32 = vmul.f32 %v672_v43, %v620_v37  ;;  %v701_v23 = vmul.f32 %v2471_v45, %v2458_v4  ;;  %v663_v28 = vmul.f32 -2.0, %v2415_v35 }
  0xec   : > { %861 = vmatpush.msrb.mxu0 %v2488_v50  ;;  %890 = vmatpush.msrb.mxu1 %v610_v53  ;;  %v707_v24 = vmul.f32 %v691_v29, %v2545_v15  ;;  %v682_v27 = vmul.f32 %v666_v51, %v614_v1  ;;  %v683_v50 = vmul.f32 %v667_v0, %v615_v5  ;;  %v3238_v0 = vsub.f32 1.0, %v2589_v39 }
  0xed   : > { %919 = vmatpush.msrb.mxu2 %v611_v59  ;;  %948 = vmatpush.msrb.mxu3 %v612_v30  ;;  %v684_v20 = vmul.f32 %v668_v63, %v616_v3  ;;  %v678_v45 = vmul.f32 %v662_v18, %v610_v53  ;;  %v702_v35 = vmul.f32 %v686_v31, %v2458_v4  ;;  %v643_v18 = vpop.permute.xlu0 %642  ;;  %v3236_v31 = vsub.f32 1.0, %v2576_v26 }
  0xee   : > { %1899 = vmatmul.msk.f32.vlgmr.msrb.gmra.mxu0 %vm717_vm8, %v2410_v33  ;;  %1903 = vmatmul.msk.f32.vlgmr.msrb.gmra.mxu1 %vm717_vm8, %v2410_v33  ;;  %v703_v22 = vmul.f32 %v687_v6, %v2458_v4  ;;  %v679_v21 = vmul.f32 %v663_v28, %v611_v59  ;;  %v680_v15 = vmul.f32 %v664_v19, %v612_v30 }
  0xef   : > { %1907 = vmatmul.msk.f32.vlgmr.msrb.gmra.mxu2 %vm717_vm8, %v2410_v33  ;;  %1911 = vmatmul.msk.f32.vlgmr.msrb.gmra.mxu3 %vm717_vm8, %v2410_v33  ;;  %v704_v36 = vmul.f32 %v688_v32, %v2458_v4  ;;  %v697_v11 = vmul.f32 %v681_v7, %v2599_v16  ;;  %v698_v37 = vmul.f32 %v682_v27, %v2599_v16 }
  0xf0   : > { %974 = vmatpush.msra.mxu0 %v705_v25  ;;  %1003 = vmatpush.msra.mxu1 %v706_v48  ;;  %v638_v29 = vpop.permute.xlu1 %637  ;;  %v699_v51 = vmul.f32 %v683_v50, %v2599_v16  ;;  %v700_v53 = vmul.f32 %v684_v20, %v2599_v16  ;;  %v693_v43 = vmul.f32 %v2497_v52, %v2481_v49  ;;  %v633_v16 = vpop.permute.xlu2 %632 }
  0xf1   : > { %1032 = vmatpush.msra.mxu2 %v707_v24  ;;  %1061 = vmatpush.msra.mxu3 %v708_v34  ;;  %v694_v4 = vmul.f32 %v678_v45, %v2481_v49  ;;  %v695_v7 = vmul.f32 %v679_v21, %v2481_v49  ;;  %v696_v59 = vmul.f32 %v680_v15, %v2481_v49 }
  0xf2   : > { %975 = vmatpush.msra.mxu0 %v701_v23  ;;  %1004 = vmatpush.msra.mxu1 %v702_v35  ;;  %v657_v63 = vmul.f32 %v643_v18, %v585_v60  ;;  %v658_v1 = vmul.f32 %v643_v18, %v586_v10  ;;  %v659_v52 = vmul.f32 %v643_v18, %v587_v12  ;;  %v3231_v10 = vsub.f32 1.0, %v2532_v62 }
  0xf3   : > { %1033 = vmatpush.msra.mxu2 %v703_v22  ;;  %1062 = vmatpush.msra.mxu3 %v704_v36  ;;  %v660_v5 = vmul.f32 %v643_v18, %v588_v13  ;;  %v653_v54 = vmul.f32 %v638_v29, %v581_v42  ;;  %v654_v56 = vmul.f32 %v638_v29, %v3229_v55  ;;  %v3232_v13 = vsub.f32 1.0, %v2543_v14 }
  0xf4   : > { %976 = vmatpush.msra.mxu0 %v697_v11  ;;  %1005 = vmatpush.msra.mxu1 %v698_v37  ;;  %v649_v60 = vmul.f32 %v633_v16, %v3230_v57  ;;  %v655_v12 = vmul.f32 %v638_v29, %v3231_v10  ;;  %v650_v42 = vmul.f32 %v633_v16, %v3233_v40  ;;  %v3235_v23 = vsub.f32 1.0, %v2473_v46  ;;  %v1391_v46 = vld [vmem:[#allocation2] sm:$0x1] }
  0xf5   : > { %1034 = vmatpush.msra.mxu2 %v699_v51  ;;  %1063 = vmatpush.msra.mxu3 %v700_v53  ;;  %v656_v3 = vmul.f32 %v638_v29, %v3232_v13  ;;  %v651_v61 = vmul.f32 %v633_v16, %v3234_v58  ;;  %v3237_v62 = vsub.f32 1.0, %v2555_v8  ;;  %v2814_v10 = vld [vmem:[%s3187_s6] sm:$0x1] }
  0xf6   : > { %977 = vmatpush.msra.mxu0 %v693_v43  ;;  %1006 = vmatpush.msra.mxu1 %v694_v4  ;;  %3239 = vst [vmem:[#allocation9_spill] sm:$0xff] %v2814_v10 }
  0xf7   : > { %1035 = vmatpush.msra.mxu2 %v695_v7  ;;  %1064 = vmatpush.msra.mxu3 %v696_v59  ;;  %v652_v14 = vmul.f32 %v633_v16, %v3237_v62 }
  0xf8   : > { %1090 = vmatpush.msrb.mxu0 %v657_v63  ;;  %1119 = vmatpush.msrb.mxu1 %v658_v1  ;;  %v628_v49 = vpop.permute.xlu1 %627 }
  0xf9   : > { %1148 = vmatpush.msrb.mxu2 %v659_v52  ;;  %1177 = vmatpush.msrb.mxu3 %v660_v5  ;;  %v645_v30 = vmul.f32 %v628_v49, %v3235_v23  ;;  %v646_v6 = vmul.f32 %v628_v49, %v3236_v31  ;;  %v647_v9 = vmul.f32 %v628_v49, %v3238_v0 }
  0xfa   : > { %1900 = vmatmul.msk.f32.gmra.mxu0 %vm717_vm8, %v2437_v38  ;;  %1904 = vmatmul.msk.f32.gmra.mxu1 %vm717_vm8, %v2437_v38  ;;  %v648_v25 = vmul.f32 %v628_v49, %v576_v17 }
  0xfb   : > { %1908 = vmatmul.msk.f32.gmra.mxu2 %vm717_vm8, %v2437_v38  ;;  %1912 = vmatmul.msk.f32.gmra.mxu3 %vm717_vm8, %v2437_v38 }
  0xfc   : > { %1091 = vmatpush.msrb.mxu0 %v653_v54  ;;  %1120 = vmatpush.msrb.mxu1 %v654_v56 }
  0xfd   : > { %1149 = vmatpush.msrb.mxu2 %v655_v12  ;;  %1178 = vmatpush.msrb.mxu3 %v656_v3 }
  0xfe   : > { %1092 = vmatpush.msrb.mxu0 %v649_v60  ;;  %1121 = vmatpush.msrb.mxu1 %v650_v42 }
  0xff   : > { %1150 = vmatpush.msrb.mxu2 %v651_v61  ;;  %1179 = vmatpush.msrb.mxu3 %v652_v14 }
 0x100   : > { %1093 = vmatpush.msrb.mxu0 %v645_v30  ;;  %1122 = vmatpush.msrb.mxu1 %v646_v6 }
 0x101   : > { %1151 = vmatpush.msrb.mxu2 %v647_v9  ;;  %1180 = vmatpush.msrb.mxu3 %v648_v25 }
 0x102   : > { %1901 = vmatmul.msk.f32.gmra.mxu0 %vm717_vm8, %v2455_v41  ;;  %1905 = vmatmul.msk.f32.gmra.mxu1 %vm717_vm8, %v2455_v41 }
 0x103   : > { %1909 = vmatmul.msk.f32.gmra.mxu2 %vm717_vm8, %v2455_v41  ;;  %1913 = vmatmul.msk.f32.gmra.mxu3 %vm717_vm8, %v2455_v41 }
 0x104   : > { %1717 = vperm.xlu1 %2041, %v1391_v46  }
 0x10a   : > { %1902 = vmatmul.msk.f32.gmra.mxu0 %vm717_vm8, %v2478_v47  ;;  %1906 = vmatmul.msk.f32.gmra.mxu1 %vm717_vm8, %v2478_v47 }
 0x10b   : > { %1910 = vmatmul.msk.f32.gmra.mxu2 %vm717_vm8, %v2478_v47  ;;  %1914 = vmatmul.msk.f32.gmra.mxu3 %vm717_vm8, %v2478_v47 }
 0x10e   : > { %v1207_v27 = vpop.permute.xlu0 %1206 }
 0x10f   : > { %v1202_v20 = vpop.permute.xlu1 %1201 }
 0x112   : > { %1915 = vmatmul.msk.f32.vlgmr.msra.gmra.mxu0 %vm717_vm8, %v2410_v33  ;;  %1919 = vmatmul.msk.f32.vlgmr.msra.gmra.mxu1 %vm717_vm8, %v2410_v33 }
 0x113   : > { %1923 = vmatmul.msk.f32.vlgmr.msra.gmra.mxu2 %vm717_vm8, %v2410_v33  ;;  %1927 = vmatmul.msk.f32.vlgmr.msra.gmra.mxu3 %vm717_vm8, %v2410_v33 }
 0x11a   : > { %1916 = vmatmul.msk.f32.gmra.mxu0 %vm717_vm8, %v2437_v38  ;;  %1920 = vmatmul.msk.f32.gmra.mxu1 %vm717_vm8, %v2437_v38 }
 0x11b   : > { %1924 = vmatmul.msk.f32.gmra.mxu2 %vm717_vm8, %v2437_v38  ;;  %1928 = vmatmul.msk.f32.gmra.mxu3 %vm717_vm8, %v2437_v38 }
 0x122   : > { %1917 = vmatmul.msk.f32.gmra.mxu0 %vm717_vm8, %v2455_v41  ;;  %1921 = vmatmul.msk.f32.gmra.mxu1 %vm717_vm8, %v2455_v41 }
 0x123   : > { %1925 = vmatmul.msk.f32.gmra.mxu2 %vm717_vm8, %v2455_v41  ;;  %1929 = vmatmul.msk.f32.gmra.mxu3 %vm717_vm8, %v2455_v41 }
 0x12a   : > { %1918 = vmatmul.msk.f32.gmra.mxu0 %vm717_vm8, %v2478_v47  ;;  %1922 = vmatmul.msk.f32.gmra.mxu1 %vm717_vm8, %v2478_v47 }
 0x12b   : > { %1926 = vmatmul.msk.f32.gmra.mxu2 %vm717_vm8, %v2478_v47  ;;  %1930 = vmatmul.msk.f32.gmra.mxu3 %vm717_vm8, %v2478_v47 }
 0x132   : > { %1931 = vmatmul.msk.f32.vlgmr.msrb.gmra.mxu0 %vm717_vm8, %v2410_v33  ;;  %1935 = vmatmul.msk.f32.vlgmr.msrb.gmra.mxu1 %vm717_vm8, %v2410_v33 }
 0x133   : > { %1939 = vmatmul.msk.f32.vlgmr.msrb.gmra.mxu2 %vm717_vm8, %v2410_v33  ;;  %1943 = vmatmul.msk.f32.vlgmr.msrb.gmra.mxu3 %vm717_vm8, %v2410_v33  ;;  %v1212_v33 = vpop.permute.xlu2 %1211 }
 0x136   : > { %v747_v2 = vpop.f32.mrf.mxu0 }
 0x137   : > { %v776_v8 = vpop.f32.mrf.mxu1 }
 0x13a   : > { %1932 = vmatmul.msk.f32.gmra.mxu0 %vm717_vm8, %v2437_v38  ;;  %1936 = vmatmul.msk.f32.gmra.mxu1 %vm717_vm8, %v2437_v38 }
 0x13b   : > { %1940 = vmatmul.msk.f32.gmra.mxu2 %vm717_vm8, %v2437_v38  ;;  %1944 = vmatmul.msk.f32.gmra.mxu3 %vm717_vm8, %v2437_v38  ;;  %v1197_v28 = vpop.permute.xlu2 %1196 }
 0x13c   : > { %v1214_v34 = vadd.f32 %v1197_v28, %v747_v2  ;;  %v1215_v11 = vadd.f32 %v1197_v28, %v776_v8 }
 0x13e   : > { %v805_v26 = vpop.f32.mrf.mxu2  ;;  %v2766_v39 = vpop.f32.mrf.mxu3  ;;  %2080 = vtanh.f32 %v1214_v34 }
 0x13f   : > { %v750_v44 = vpop.f32.mrf.mxu0  ;;  %v779_v17 = vpop.f32.mrf.mxu1  ;;  %v1216_v54 = vadd.f32 %v1197_v28, %v805_v26  ;;  %v1217_v56 = vadd.f32 %v1197_v28, %v2766_v39 }
 0x140   : > { %v1218_v15 = vadd.f32 %v1202_v20, %v750_v44  ;;  %v1219_v36 = vadd.f32 %v1202_v20, %v779_v17 }
 0x142   : > { %1933 = vmatmul.msk.f32.gmra.mxu0 %vm717_vm8, %v2455_v41  ;;  %1937 = vmatmul.msk.f32.gmra.mxu1 %vm717_vm8, %v2455_v41 }
 0x143   : > { %1941 = vmatmul.msk.f32.gmra.mxu2 %vm717_vm8, %v2455_v41  ;;  %1945 = vmatmul.msk.f32.gmra.mxu3 %vm717_vm8, %v2455_v41 }
 0x146   : > { %v808_v32 = vpop.f32.mrf.mxu2  ;;  %v837_v38 = vpop.f32.mrf.mxu3 }
 0x147   : > { %v753_v48 = vpop.f32.mrf.mxu0  ;;  %v782_v24 = vpop.f32.mrf.mxu1  ;;  %v1220_v7 = vadd.f32 %v1202_v20, %v808_v32  ;;  %v1221_v16 = vadd.f32 %v1202_v20, %v837_v38 }
 0x148   : > { %v1222_v41 = vadd.f32 %v1207_v27, %v753_v48  ;;  %v1223_v50 = vadd.f32 %v1207_v27, %v782_v24 }
 0x14a   : > { %1934 = vmatmul.msk.f32.gmra.mxu0 %vm717_vm8, %v2478_v47  ;;  %1938 = vmatmul.msk.f32.gmra.mxu1 %vm717_vm8, %v2478_v47  ;;  %2082 = vtanh.f32 %v1222_v41 }
 0x14b   : > { %1942 = vmatmul.msk.f32.gmra.mxu2 %vm717_vm8, %v2478_v47  ;;  %1946 = vmatmul.msk.f32.gmra.mxu3 %vm717_vm8, %v2478_v47  ;;  %2084 = vtanh.f32 %v1223_v50  ;;  %v2784_v47 = vpop.eup %2080 }
 0x14c   : > { %v1246_v48 = vmul.f32 %v2784_v47, %v2784_v47 }
 0x14e   : > { %v811_v19 = vpop.f32.mrf.mxu2  ;;  %v840_v45 = vpop.f32.mrf.mxu3 }
 0x14f   : > { %v756_v35 = vpop.f32.mrf.mxu0  ;;  %v785_v22 = vpop.f32.mrf.mxu1  ;;  %v1224_v37 = vadd.f32 %v1207_v27, %v811_v19  ;;  %v1225_v18 = vadd.f32 %v1207_v27, %v840_v45 }
 0x150   : > { %v1226_v29 = vadd.f32 %v1212_v33, %v756_v35  ;;  %v1227_v21 = vadd.f32 %v1212_v33, %v785_v22  ;;  %v2786_v51 = vpop.eup %2082 }
 0x151   : > { %v2788_v4 = vpop.eup %2084  ;;  %v1254_v8 = vmul.f32 %v2786_v51, %v2786_v51 }
 0x152   : > { %2086 = vtanh.f32 %v1226_v29  ;;  %v1255_v26 = vmul.f32 %v2788_v4, %v2788_v4 }
 0x153   : > { %2088 = vtanh.f32 %v1227_v21  ;;  %v2894_v34 = vsub.f32 1.0, %v1254_v8 }
 0x154   : > { %2090 = vtanh.f32 %v1218_v15  ;;  %v2896_v41 = vsub.f32 1.0, %v1255_v26 }
 0x155   : > { %2092 = vtanh.f32 %v1219_v36 }
 0x156   : > { %2094 = vtanh.f32 %v1215_v11  ;;  %v814_v53 = vpop.f32.mrf.mxu2  ;;  %v843_v43 = vpop.f32.mrf.mxu3 }
 0x157   : > { %2096 = vtanh.f32 %v1224_v37  ;;  %v1228_v59 = vadd.f32 %v1212_v33, %v814_v53  ;;  %v1229_v63 = vadd.f32 %v1212_v33, %v843_v43  ;;  %v2930_v37 = vsub.f32 1.0, %v1246_v48 }
 0x158   : > { %v2790_v1 = vpop.eup %2086  ;;  %2098 = vtanh.f32 %v1225_v18 }
 0x159   : > { %v2792_v52 = vpop.eup %2088  ;;  %2100 = vtanh.f32 %v1228_v59  ;;  %1407 = vmatpush.msra.mxu0 %v2790_v1  ;;  %v1258_v46 = vmul.f32 %v2790_v1, %v2790_v1 }
 0x15a   : > { %v2795_v5 = vpop.eup %2090  ;;  %2102 = vtanh.f32 %v1229_v63  ;;  %1427 = vmatpush.msra.mxu1 %v2792_v52  ;;  %v1259_v2 = vmul.f32 %v2792_v52, %v2792_v52 }
 0x15b   : > { %v2798_v49 = vpop.eup %2092  ;;  %2104 = vtanh.f32 %v1220_v7  ;;  %1408 = vmatpush.msra.mxu0 %v2786_v51  ;;  %v1250_v39 = vmul.f32 %v2795_v5, %v2795_v5  ;;  %v2882_v32 = vsub.f32 1.0, %v1258_v46 }
 0x15c   : > { %v2801_v55 = vpop.eup %2094  ;;  %2106 = vtanh.f32 %v1221_v16  ;;  %1428 = vmatpush.msra.mxu1 %v2788_v4  ;;  %v1251_v44 = vmul.f32 %v2798_v49, %v2798_v49  ;;  %v2884_v38 = vsub.f32 1.0, %v1259_v2 }
 0x15d   : > { %v2805_v57 = vpop.eup %2096  ;;  %1409 = vmatpush.msra.mxu0 %v2795_v5  ;;  %2108 = vtanh.f32 %v1216_v54  ;;  %v1247_v24 = vmul.f32 %v2801_v55, %v2801_v55  ;;  %v2910_v35 = vsub.f32 1.0, %v1250_v39 }
 0x15e   : > { %v2808_v60 = vpop.eup %2098  ;;  %1429 = vmatpush.msra.mxu1 %v2798_v49  ;;  %2110 = vtanh.f32 %v1217_v56  ;;  %v2912_v22 = vsub.f32 1.0, %v1251_v44  ;;  %v1256_v36 = vmul.f32 %v2805_v57, %v2805_v57 }
 0x15f   : > { %v2816_v12 = vpop.eup %2100  ;;  %1410 = vmatpush.msra.mxu0 %v2784_v47  ;;  %v1257_v11 = vmul.f32 %v2808_v60, %v2808_v60  ;;  %v2932_v18 = vsub.f32 1.0, %v1247_v24 }
 0x160   : > { %v2819_v13 = vpop.eup %2102  ;;  %1430 = vmatpush.msra.mxu1 %v2801_v55  ;;  %1447 = vmatpush.msra.mxu2 %v2816_v12  ;;  %v1260_v19 = vmul.f32 %v2816_v12, %v2816_v12  ;;  %v2964_v26 = vsub.f32 1.0, %v1256_v36 }
 0x161   : > { %v2823_v3 = vpop.eup %2104  ;;  %1467 = vmatpush.msra.mxu3 %v2819_v13  ;;  %1947 = vmatmul.msk.f32.vlgmr.msra.gmra.mxu0 %vm717_vm8, %v2814_v10  ;;  %v1261_v45 = vmul.f32 %v2819_v13, %v2819_v13  ;;  %v2966_v39 = vsub.f32 1.0, %v1257_v11 }
 0x162   : > { %v2828_v40 = vpop.eup %2106  ;;  %1948 = vmatmul.msk.f32.vlgmr.msra.gmra.mxu1 %vm717_vm8, %v2814_v10  ;;  %1448 = vmatpush.msra.mxu2 %v2805_v57  ;;  %v1252_v7 = vmul.f32 %v2823_v3, %v2823_v3  ;;  %v2948_v63 = vsub.f32 1.0, %v1260_v19  ;;  %3250 = vst [vmem:[#allocation20_spill] sm:$0xff] %v2964_v26 }
 0x163   : > { %1468 = vmatpush.msra.mxu3 %v2808_v60  ;;  %v2835_v42 = vpop.eup %2108  ;;  %v1253_v59 = vmul.f32 %v2828_v40, %v2828_v40  ;;  %v2950_v16 = vsub.f32 1.0, %v1261_v45  ;;  %3251 = vst [vmem:[#allocation21_spill] sm:$0xff] %v2966_v39 }
 0x164   : > { %1449 = vmatpush.msra.mxu2 %v2823_v3  ;;  %v2838_v58 = vpop.eup %2110  ;;  %v1248_v15 = vmul.f32 %v2835_v42, %v2835_v42  ;;  %3246 = vst [vmem:[#allocation16_spill] sm:$0xff] %v2948_v63  ;;  %v2980_v45 = vsub.f32 1.0, %v1252_v7 }
 0x165   : > { %1469 = vmatpush.msra.mxu3 %v2828_v40  ;;  %3247 = vst [vmem:[#allocation17_spill] sm:$0xff] %v2950_v16  ;;  %v1249_v46 = vmul.f32 %v2838_v58, %v2838_v58  ;;  %v2982_v36 = vsub.f32 1.0, %v1253_v59 }
 0x166   : > { %1450 = vmatpush.msra.mxu2 %v2835_v42  ;;  %3252 = vst [vmem:[#allocation22_spill] sm:$0xff] %v2980_v45  ;;  %v2998_v7 = vsub.f32 1.0, %v1248_v15 }
 0x167   : > { %1470 = vmatpush.msra.mxu3 %v2838_v58  ;;  %1949 = vmatmul.msk.f32.vlgmr.msra.gmra.mxu2 %vm717_vm8, %v2814_v10  ;;  %3253 = vst [vmem:[#allocation23_spill] sm:$0xff] %v2982_v36  ;;  %v3000_v59 = vsub.f32 1.0, %v1249_v46 }
 0x168   : > { %1950 = vmatmul.msk.f32.vlgmr.msra.gmra.mxu3 %vm717_vm8, %v2814_v10  ;;  %3254 = vst [vmem:[#allocation24_spill] sm:$0xff] %v2998_v7 }
 0x169   : > { %3255 = vst [vmem:[#allocation25_spill] sm:$0xff] %v3000_v59 }
 0x16b   : > { %v2846_v61 = vpop.f32.mrf.mxu0  ;;  %v2848_v23 = vpop.f32.mrf.mxu1 }
 0x16c   : > { %v1294_v54 = vmul.f32 %v2930_v37, %v2846_v61  ;;  %v1295_v56 = vmul.f32 %v2932_v18, %v2848_v23 }
 0x172   : > { %v2850_v30 = vpop.f32.mrf.mxu2  ;;  %v2852_v31 = vpop.f32.mrf.mxu3 }
 0x173   : > { %3240 = vst [vmem:[#allocation10_spill] sm:$0xff] %v2850_v30  ;;  %v1297_v15 = vmul.f32 %v3000_v59, %v2852_v31  ;;  %v1326_v59 = vmul.f32 2.0, %v2784_v47  ;;  %v1332_v47 = vmul.f32 2.0, %v2823_v3 }
 0x174   : > { %3241 = vst [vmem:[#allocation11_spill] sm:$0xff] %v2852_v31 }
 0x177   : > { %v2854_v6 = vpop.f32.mrf.mxu0  ;;  %v2856_v62 = vpop.f32.mrf.mxu1 }
 0x178   : > { %v2936_v53 = vmul.f32 %v2910_v35, %v2854_v6  ;;  %v2940_v43 = vmul.f32 %v2912_v22, %v2856_v62 }
 0x17e   : > { %v2858_v14 = vpop.f32.mrf.mxu2  ;;  %v2860_v0 = vpop.f32.mrf.mxu3 }
 0x17f   : > { %3242 = vst [vmem:[#allocation12_spill] sm:$0xff] %v2858_v14  ;;  %v2862_v9 = vpop.f32.mrf.mxu0  ;;  %v2864_v25 = vpop.f32.mrf.mxu1 }
 0x180   : > { %3243 = vst [vmem:[#allocation13_spill] sm:$0xff] %v2860_v0  ;;  %v2916_v29 = vmul.f32 %v2894_v34, %v2862_v9  ;;  %v2920_v21 = vmul.f32 %v2896_v41, %v2864_v25 }
 0x186   : > { %v2878_v17 = vpop.f32.mrf.mxu2  ;;  %v2880_v33 = vpop.f32.mrf.mxu3 }
 0x187   : > { %3244 = vst [vmem:[#allocation14_spill] sm:$0xff] %v2878_v17  ;;  %v2890_v27 = vpop.f32.mrf.mxu0  ;;  %v2892_v28 = vpop.f32.mrf.mxu1  ;;  %v2986_v11 = vmul.f32 %v2964_v26, %v2878_v17  ;;  %v1342_v26 = vmul.f32 %v1326_v59, %v1294_v54  ;;  %v1339_v17 = vmul.f32 2.0, %v2792_v52  ;;  %v1336_v52 = vmul.f32 2.0, %v2805_v57 }
 0x188   : > { %3245 = vst [vmem:[#allocation15_spill] sm:$0xff] %v2880_v33  ;;  %v2900_v50 = vmul.f32 %v2882_v32, %v2890_v27  ;;  %v2904_v20 = vmul.f32 %v2884_v38, %v2892_v28 }
 0x18a   : > { %1487 = vmatpush.msrb.mxu0 %v2900_v50  ;;  %1507 = vmatpush.msrb.mxu1 %v2904_v20 }
 0x18c   : > { %1488 = vmatpush.msrb.mxu0 %v2916_v29  ;;  %1508 = vmatpush.msrb.mxu1 %v2920_v21 }
 0x18e   : > { %v2958_v2 = vpop.f32.mrf.mxu2  ;;  %v2960_v8 = vpop.f32.mrf.mxu3  ;;  %1489 = vmatpush.msrb.mxu0 %v2936_v53  ;;  %1509 = vmatpush.msrb.mxu1 %v2940_v43 }
 0x18f   : > { %3248 = vst [vmem:[#allocation18_spill] sm:$0xff] %v2958_v2  ;;  %v2970_v44 = vmul.f32 %v2948_v63, %v2958_v2  ;;  %v2974_v48 = vmul.f32 %v2950_v16, %v2960_v8  ;;  %v2976_v24 = vpop.f32.mrf.mxu0  ;;  %v2978_v19 = vpop.f32.mrf.mxu1  ;;  %v2990_v63 = vmul.f32 %v2966_v39, %v2880_v33  ;;  %v3004_v16 = vmul.f32 %v2980_v45, %v2858_v14 }
 0x190   : > { %3249 = vst [vmem:[#allocation19_spill] sm:$0xff] %v2960_v8  ;;  %1490 = vmatpush.msrb.mxu0 %v1294_v54  ;;  %1510 = vmatpush.msrb.mxu1 %v1295_v56  ;;  %v3008_v33 = vmul.f32 %v2982_v36, %v2860_v0  ;;  %v1296_v39 = vmul.f32 %v2998_v7, %v2850_v30  ;;  %v1328_v45 = vmul.f32 2.0, %v2835_v42  ;;  %v1334_v8 = vmul.f32 2.0, %v2786_v51 }
 0x191   : > { %1527 = vmatpush.msrb.mxu2 %v2970_v44  ;;  %1547 = vmatpush.msrb.mxu3 %v2974_v48  ;;  %v1338_v2 = vmul.f32 2.0, %v2790_v1  ;;  %v1355_v54 = vmul.f32 %v1339_v17, %v2904_v20  ;;  %v1330_v51 = vmul.f32 2.0, %v2795_v5  ;;  %v1333_v1 = vmul.f32 2.0, %v2828_v40 }
 0x192   : > { %1951 = vmatmul.msk.f32.vlgmr.msrb.gmra.mxu0 %vm717_vm8, %v2814_v10  ;;  %1952 = vmatmul.msk.f32.vlgmr.msrb.gmra.mxu1 %vm717_vm8, %v2814_v10  ;;  %3256 = vst [vmem:[#allocation26_spill] sm:$0xff] %v3008_v33  ;;  %v3056_v17 = vmul.f32 %v1328_v45, %v1296_v39 }
 0x193   : > { %1528 = vmatpush.msrb.mxu2 %v2986_v11  ;;  %1548 = vmatpush.msrb.mxu3 %v2990_v63  ;;  %v1354_v42 = vmul.f32 %v1338_v2, %v2900_v50  ;;  %v1346_v57 = vmul.f32 %v1330_v51, %v2936_v53  ;;  %v3266_v51 = vld [vmem:[#allocation21_spill] sm:$0xff] }
 0x195   : > { %1529 = vmatpush.msrb.mxu2 %v3004_v16  ;;  %1549 = vmatpush.msrb.mxu3 %v3008_v33  ;;  %v1350_v33 = vmul.f32 %v1334_v8, %v2916_v29  ;;  %v1370_v29 = vmul.f32 %v1354_v42, %v2890_v27  ;;  %v1362_v8 = vmul.f32 %v1346_v57, %v2854_v6 }
 0x196   : > { %v3018_v46 = vpop.f32.mrf.mxu2  ;;  %v3020_v14 = vpop.f32.mrf.mxu3  ;;  %v3263_v59 = vld [vmem:[#allocation18_spill] sm:$0xff] }
 0x197   : > { %3257 = vst [vmem:[#allocation27_spill] sm:$0xff] %v3018_v46  ;;  %1530 = vmatpush.msrb.mxu2 %v1296_v39  ;;  %1550 = vmatpush.msrb.mxu3 %v1297_v15  ;;  %v982_v0 = vpop.f32.mrf.mxu0  ;;  %v1011_v36 = vpop.f32.mrf.mxu1  ;;  %v1366_v20 = vmul.f32 %v1350_v33, %v2862_v9 }
 0x198   : > { %3258 = vst [vmem:[#allocation28_spill] sm:$0xff] %v3020_v14  ;;  %1953 = vmatmul.msk.f32.vlgmr.msrb.gmra.mxu2 %vm717_vm8, %v2814_v10  ;;  %1954 = vmatmul.msk.f32.vlgmr.msrb.gmra.mxu3 %vm717_vm8, %v2814_v10  ;;  %v1327_v14 = vmul.f32 2.0, %v2801_v55  ;;  %v1335_v55 = vmul.f32 2.0, %v2788_v4  ;;  %v1341_v4 = vmul.f32 2.0, %v2819_v13  ;;  %v1314_v27 = vmul.f32 %v2910_v35, %v982_v0 }
 0x199   : > { %v1348_v0 = vmul.f32 %v1332_v47, %v3004_v16  ;;  %v3268_v47 = vld [vmem:[#allocation17_spill] sm:$0xff] }
 0x19a   : > { %v1343_v10 = vmul.f32 %v1327_v14, %v1295_v56  ;;  %v1351_v3 = vmul.f32 %v1335_v55, %v2920_v21  ;;  %v1340_v14 = vmul.f32 2.0, %v2816_v12  ;;  %v1371_v12 = vmul.f32 %v1355_v54, %v2892_v28 }
 0x19b   : > { %v1357_v33 = vmul.f32 %v1341_v4, %v2974_v48  ;;  %v1315_v28 = vmul.f32 %v2912_v22, %v1011_v36  ;;  %v3261_v36 = vld [vmem:[#allocation26_spill] sm:$0xff]  ;;  %v3269_v4 = vld [vmem:[#allocation15_spill] sm:$0xff] }
 0x19c   : > { %v3054_v50 = vmul.f32 %v1343_v10, %v2848_v23  ;;  %v1367_v56 = vmul.f32 %v1351_v3, %v2864_v25  ;;  %v1356_v9 = vmul.f32 %v1340_v14, %v2970_v44  ;;  %v1310_v25 = vmul.f32 %v2930_v37, %v2976_v24 }
 0x19d   : > { %v1311_v44 = vmul.f32 %v2932_v18, %v2978_v19  ;;  %v3265_v19 = vld [vmem:[#allocation20_spill] sm:$0xff] }
 0x19e   : > { %v3026_v30 = vpop.f32.mrf.mxu2  ;;  %v3028_v31 = vpop.f32.mrf.mxu3 }
 0x19f   : > { %3259 = vst [vmem:[#allocation29_spill] sm:$0xff] %v3026_v30  ;;  %v985_v7 = vpop.f32.mrf.mxu0  ;;  %v1014_v46 = vpop.f32.mrf.mxu1  ;;  %v1329_v30 = vmul.f32 2.0, %v2838_v58  ;;  %v1337_v58 = vmul.f32 2.0, %v2808_v60 }
 0x1a0   : > { %3260 = vst [vmem:[#allocation30_spill] sm:$0xff] %v3028_v31  ;;  %v1331_v31 = vmul.f32 2.0, %v2798_v49  ;;  %v3048_v49 = vmul.f32 %v1342_v26, %v2846_v61  ;;  %v1318_v10 = vmul.f32 %v2894_v34, %v985_v7  ;;  %v1319_v23 = vmul.f32 %v2896_v41, %v1014_v46  ;;  %v3262_v7 = vld [vmem:[#allocation14_spill] sm:$0xff] }
 0x1a1   : > { %v3058_v5 = vmul.f32 %v1329_v30, %v1297_v15  ;;  %v1353_v39 = vmul.f32 %v1337_v58, %v2990_v63  ;;  %v3264_v15 = vld [vmem:[#allocation19_spill] sm:$0xff]  ;;  %v1378_v46 = vsub.f32 %v1314_v27, %v1362_v8  ;;  %v3267_v58 = vld [vmem:[#allocation16_spill] sm:$0xff]  ;;  %v3280_v8 = vld [vmem:[#allocation10_spill] sm:$0xff] }
 0x1a2   : > { %v1347_v61 = vmul.f32 %v1331_v31, %v2940_v43  ;;  %v1352_v31 = vmul.f32 %v1336_v52, %v2986_v11  ;;  %v1382_v45 = vsub.f32 %v1318_v10, %v1366_v20  ;;  %v1383_v48 = vsub.f32 %v1319_v23, %v1367_v56  ;;  %v3275_v56 = vld [vmem:[#allocation13_spill] sm:$0xff] }
 0x1a3   : > { %v1349_v11 = vmul.f32 %v1333_v1, %v3261_v36  ;;  %v1373_v63 = vmul.f32 %v1357_v33, %v3264_v15  ;;  %v1369_v57 = vmul.f32 %v1353_v39, %v3269_v4  ;;  %v1375_v20 = vsub.f32 %v1311_v44, %v3054_v50  ;;  %v3277_v33 = vld [vmem:[#allocation24_spill] sm:$0xff]  ;;  %v3279_v50 = vld [vmem:[#allocation25_spill] sm:$0xff] }
 0x1a4   : > { %v1363_v26 = vmul.f32 %v1347_v61, %v2856_v62  ;;  %v1368_v6 = vmul.f32 %v1352_v31, %v3262_v7  ;;  %v1372_v62 = vmul.f32 %v1356_v9, %v3263_v59  ;;  %v1374_v61 = vsub.f32 %v1310_v25, %v3048_v49  ;;  %v3276_v9 = vld [vmem:[#allocation27_spill] sm:$0xff]  ;;  %v3278_v49 = vld [vmem:[#allocation28_spill] sm:$0xff]  ;;  %v3281_v39 = vld [vmem:[#allocation9_spill] sm:$0xff] }
 0x1a5   : > { %v1365_v31 = vmul.f32 %v1349_v11, %v3275_v56  ;;  %v1312_v27 = vmul.f32 %v3277_v33, %v3276_v9  ;;  %v3282_v25 = vld [vmem:[#allocation11_spill] sm:$0xff] }
 0x1a6   : > { %v1043_v40 = vpop.f32.mrf.mxu2  ;;  %v1072_v60 = vpop.f32.mrf.mxu3  ;;  %v1379_v55 = vsub.f32 %v1315_v28, %v1363_v26  ;;  %v1313_v28 = vmul.f32 %v3279_v50, %v3278_v49  ;;  %v1360_v26 = vmul.f32 %v3056_v17, %v3280_v8  ;;  %v1361_v44 = vmul.f32 %v3058_v5, %v3282_v25 }
 0x1a7   : > { %v988_v13 = vpop.f32.mrf.mxu0  ;;  %v1017_v21 = vpop.f32.mrf.mxu1  ;;  %v1320_v54 = vmul.f32 %v3265_v19, %v1043_v40  ;;  %v1321_v52 = vmul.f32 %v3266_v51, %v1072_v60  ;;  %v3272_v40 = vld [vmem:[#allocation30_spill] sm:$0xff] }
 0x1a8   : > { %v1322_v30 = vmul.f32 %v2882_v32, %v988_v13  ;;  %v1323_v53 = vmul.f32 %v2884_v38, %v1017_v21  ;;  %v3273_v21 = vld [vmem:[#allocation23_spill] sm:$0xff]  ;;  %v1376_v11 = vsub.f32 %v1312_v27, %v1360_v26  ;;  %v1377_v7 = vsub.f32 %v1313_v28, %v1361_v44 }
 0x1a9   : > { %v1317_v60 = vmul.f32 %v3273_v21, %v3272_v40  ;;  %v1738_v27 = vstv %s2356_s20  ;;  %s1873_s20 = sshll.u32 %s313_s22, 3 }
 0x1aa   : > { %v1386_v43 = vsub.f32 %v1322_v30, %v1370_v29  ;;  %v1387_v2 = vsub.f32 %v1323_v53, %v1371_v12  ;;  %v3270_v29 = vld [vmem:[#allocation29_spill] sm:$0xff]  ;;  %v3271_v12 = vld [vmem:[#allocation22_spill] sm:$0xff]  ;;  %v3274_v30 = vld [vmem:[#allocation12_spill] sm:$0xff]  ;;  %s315_s7 = scalar_lea.vmem [#allocation6], %s1873_s20 }
 0x1ab   : > { %v1316_v13 = vmul.f32 %v3271_v12, %v3270_v29  ;;  %v1364_v53 = vmul.f32 %v1348_v0, %v3274_v30  ;;  %v1718_v29 = vpop.permute.xlu1 %1717  ;;  %s1793_s27 = sshll.u32 %s315_s7, 4  ;;  %s1794_s27 = int_to_ptr.vmem [resolvable:$true] %s1793_s27 }
 0x1ac   : > { %1567 = vmatpush.msra.mxu0 %v1386_v43  ;;  %1587 = vmatpush.msra.mxu1 %v1387_v2  ;;  %v1384_v43 = vsub.f32 %v1320_v54, %v1368_v6  ;;  %v1385_v2 = vsub.f32 %v1321_v52, %v1369_v57  ;;  %v1720_v40 = vperm.slane %v1718_v29, 0 }
 0x1ae   : > { %v1046_v24 = vpop.f32.mrf.mxu2  ;;  %v1075_v42 = vpop.f32.mrf.mxu3  ;;  %1568 = vmatpush.msra.mxu0 %v1382_v45  ;;  %1588 = vmatpush.msra.mxu1 %v1383_v48  ;;  %v1380_v45 = vsub.f32 %v1316_v13, %v1364_v53  ;;  %v1381_v48 = vsub.f32 %v1317_v60, %v1365_v31  ;;  %v1725_v60 = vstv %s1879_s21  ;;  %s2147_s21 = scalar_lea.hbm %s3189_s8, 16 }
 0x1af   : > { %v1324_v16 = vmul.f32 %v3267_v58, %v1046_v24  ;;  %v1325_v1 = vmul.f32 %v3268_v47, %v1075_v42  ;;  %v1095_v3 = vpop.f32.mrf.mxu0  ;;  %v1124_v14 = vpop.f32.mrf.mxu1  ;;  %p2149_p4 = scmp.lt.s32.totalorder %s2147_s21, %s2143_s13 }
 0x1b0   : > { %1569 = vmatpush.msra.mxu0 %v1378_v46  ;;  %1589 = vmatpush.msra.mxu1 %v1379_v55  ;;  %v1278_v57 = vmul.f32 %v2930_v37, %v1095_v3 }
 0x1b1   : > { %v1388_v10 = vsub.f32 %v1324_v16, %v1372_v62  ;;  %v1389_v23 = vsub.f32 %v1325_v1, %v1373_v63  ;;  %p2150_p7 = por %p2149_p4, %p2148_p3 }
 0x1b2   : > { %1570 = vmatpush.msra.mxu0 %v1374_v61  ;;  %1590 = vmatpush.msra.mxu1 %v1375_v20  ;;  %v1279_v61 = vmul.f32 %v2932_v18, %v1124_v14 }
 0x1b3   : > { %1607 = vmatpush.msra.mxu2 %v1388_v10  ;;  %1627 = vmatpush.msra.mxu3 %v1389_v23  ;;  %p2151_p8 = pnand %p2150_p7, %p2146_p2 }
 0x1b4   : > { %1955 = vmatmul.msk.f32.vlgmr.msra.gmra.mxu0 %vm717_vm8, %v3281_v39  ;;  %1956 = vmatmul.msk.f32.vlgmr.msra.gmra.mxu1 %vm717_vm8, %v3281_v39 }
 0x1b5   : > { %1608 = vmatpush.msra.mxu2 %v1384_v43  ;;  %1628 = vmatpush.msra.mxu3 %v1385_v2 }
 0x1b6   : > { %v1153_v0 = vpop.f32.mrf.mxu2  ;;  %v1182_v36 = vpop.f32.mrf.mxu3 }
 0x1b7   : > { %1609 = vmatpush.msra.mxu2 %v1380_v45  ;;  %1629 = vmatpush.msra.mxu3 %v1381_v48  ;;  %v1098_v17 = vpop.f32.mrf.mxu0  ;;  %v1127_v6 = vpop.f32.mrf.mxu1  ;;  %v1280_v18 = vmul.f32 %v3277_v33, %v1153_v0 }
 0x1b8   : > { %v1282_v1 = vmul.f32 %v2910_v35, %v1098_v17  ;;  %v1283_v4 = vmul.f32 %v2912_v22, %v1127_v6 }
 0x1b9   : > { %1610 = vmatpush.msra.mxu2 %v1376_v11  ;;  %1630 = vmatpush.msra.mxu3 %v1377_v7 }
 0x1ba   : > { %1957 = vmatmul.msk.f32.vlgmr.msra.gmra.mxu2 %vm717_vm8, %v3281_v39  ;;  %1958 = vmatmul.msk.f32.vlgmr.msra.gmra.mxu3 %vm717_vm8, %v3281_v39 }
 0x1be   : > { %v1156_v5 = vpop.f32.mrf.mxu2  ;;  %v1185_v59 = vpop.f32.mrf.mxu3 }
 0x1bf   : > { %v1101_v62 = vpop.f32.mrf.mxu0  ;;  %v1130_v15 = vpop.f32.mrf.mxu1  ;;  %v1284_v22 = vmul.f32 %v3271_v12, %v1156_v5  ;;  %v1285_v37 = vmul.f32 %v3273_v21, %v1185_v59 }
 0x1c0   : > { %v1286_v52 = vmul.f32 %v2894_v34, %v1101_v62  ;;  %v1287_v16 = vmul.f32 %v2896_v41, %v1130_v15 }
 0x1c6   : > { %v1159_v63 = vpop.f32.mrf.mxu2  ;;  %v1188_v46 = vpop.f32.mrf.mxu3 }
 0x1c7   : > { %v1104_v55 = vpop.f32.mrf.mxu0  ;;  %v1133_v24 = vpop.f32.mrf.mxu1  ;;  %v1288_v41 = vmul.f32 %v3265_v19, %v1159_v63  ;;  %v1289_v35 = vmul.f32 %v3266_v51, %v1188_v46  ;;  %v1281_v19 = vmul.f32 %v3279_v50, %v1182_v36 }
 0x1c8   : > { %v1290_v42 = vmul.f32 %v2882_v32, %v1104_v55  ;;  %v1291_v54 = vmul.f32 %v2884_v38, %v1133_v24 }
 0x1ca   : > { %1647 = vmatpush.msrb.mxu0 %v1290_v42  ;;  %1667 = vmatpush.msrb.mxu1 %v1291_v54 }
 0x1cc   : > { %1648 = vmatpush.msrb.mxu0 %v1286_v52  ;;  %1668 = vmatpush.msrb.mxu1 %v1287_v16 }
 0x1ce   : > { %v1162_v20 = vpop.f32.mrf.mxu2  ;;  %v1191_v32 = vpop.f32.mrf.mxu3  ;;  %1649 = vmatpush.msrb.mxu0 %v1282_v1  ;;  %1669 = vmatpush.msrb.mxu1 %v1283_v4 }
 0x1cf   : > { %v1292_v38 = vmul.f32 %v3267_v58, %v1162_v20  ;;  %v1293_v34 = vmul.f32 %v3268_v47, %v1191_v32 }
 0x1d0   : > { %1650 = vmatpush.msrb.mxu0 %v1278_v57  ;;  %1670 = vmatpush.msrb.mxu1 %v1279_v61 }
 0x1d1   : > { %1687 = vmatpush.msrb.mxu2 %v1292_v38  ;;  %1707 = vmatpush.msrb.mxu3 %v1293_v34 }
 0x1d2   : > { %1959 = vmatmul.msk.f32.vlgmr.msrb.gmra.mxu0 %vm717_vm8, %v3281_v39  ;;  %1960 = vmatmul.msk.f32.vlgmr.msrb.gmra.mxu1 %vm717_vm8, %v3281_v39 }
 0x1d3   : > { %1688 = vmatpush.msrb.mxu2 %v1288_v41  ;;  %1708 = vmatpush.msrb.mxu3 %v1289_v35 }
 0x1d5   : > { %1689 = vmatpush.msrb.mxu2 %v1284_v22  ;;  %1709 = vmatpush.msrb.mxu3 %v1285_v37 }
 0x1d7   : > { %1690 = vmatpush.msrb.mxu2 %v1280_v18  ;;  %1710 = vmatpush.msrb.mxu3 %v1281_v19 }
 0x1d8   : > { %1961 = vmatmul.msk.f32.vlgmr.msrb.gmra.mxu2 %vm717_vm8, %v3281_v39  ;;  %1962 = vmatmul.msk.f32.vlgmr.msrb.gmra.mxu3 %vm717_vm8, %v3281_v39 }
 0x1de   : > { %v1412_v58 = vpop.f32.mrf.mxu0 }
 0x1df   : > { %v1432_v51 = vpop.f32.mrf.mxu1  ;;  %v1721_v31 = vadd.f32 %v1720_v40, %v1412_v58 }
 0x1e0   : > { %v1722_v21 = vadd.f32 %v1720_v40, %v1432_v51 }
 0x1e1   : > { %v1726_v2 = vmul.f32 %v1725_v60, %v1721_v31 }
 0x1e2   : > { %v1727_v53 = vmul.f32 %v1725_v60, %v1722_v21 }
 0x1ea   : > { %v1452_v3 = vpop.f32.mrf.mxu2 }
 0x1eb   : > { %v1472_v14 = vpop.f32.mrf.mxu3  ;;  %v1723_v28 = vadd.f32 %v1720_v40, %v1452_v3 }
 0x1ec   : > { %v1724_v43 = vadd.f32 %v1720_v40, %v1472_v14 }
 0x1ed   : > { %v1728_v44 = vmul.f32 %v1725_v60, %v1723_v28 }
 0x1ee   : > { %v1729_v45 = vmul.f32 %v1725_v60, %v1724_v43 }
 0x20f   : > { %v1512_v47 = vpop.f32.mrf.mxu1  ;;  %v1492_v12 = vpop.f32.mrf.mxu0 }
 0x210   : > { %v1731_v9 = vmul.f32 %v1727_v53, %v1512_v47  ;;  %v1730_v39 = vmul.f32 %v1726_v2, %v1492_v12 }
 0x21b   : > { %v1532_v10 = vpop.f32.mrf.mxu2  ;;  %v1552_v23 = vpop.f32.mrf.mxu3 }
 0x21c   : > { %v1732_v0 = vmul.f32 %v1728_v44, %v1532_v10  ;;  %v1733_v36 = vmul.f32 %v1729_v45, %v1552_v23 }
 0x231   : > { %v1592_v13 = vpop.f32.mrf.mxu1  ;;  %v1572_v30 = vpop.f32.mrf.mxu0 }
 0x232   : > { %v1740_v8 = vmul.f32 %v1738_v27, %v1592_v13  ;;  %v1739_v11 = vmul.f32 %v1738_v27, %v1572_v30 }
 0x23d   : > { %v1612_v49 = vpop.f32.mrf.mxu2  ;;  %v1632_v50 = vpop.f32.mrf.mxu3 }
 0x23e   : > { %v1741_v17 = vmul.f32 %v1738_v27, %v1612_v49  ;;  %v1742_v59 = vmul.f32 %v1738_v27, %v1632_v50 }
 0x24f   : > { %v1672_v56 = vpop.f32.mrf.mxu1  ;;  %v1652_v26 = vpop.f32.mrf.mxu0 }
 0x250   : > { %v1735_v33 = vadd.f32 %v1731_v9, %v1672_v56  ;;  %v1734_v48 = vadd.f32 %v1730_v39, %v1652_v26 }
 0x252   : > { %v1744_v25 = vsub.f32 %v1735_v33, %v1740_v8  ;;  %v1743_v62 = vsub.f32 %v1734_v48, %v1739_v11 }
 0x254   : > { %v1752_v7 = vrot.slane %v1744_v25, 7  ;;  %v1751_v42 = vrot.slane %v1743_v62, 7 }
 0x256   : > { %v1761_v46 = vsel %vm1759_vm9, %v1722_v21, %v1752_v7  ;;  %v1760_v20 = vsel %vm1759_vm9, %v1721_v31, %v1751_v42 }
 0x257   : > { %v1768_v16 = vrot.slane %v1761_v46, 6 }
 0x259   : > { %v1772_v32 = vsel %vm1771_vm10, %v1760_v20, %v1768_v16 }
 0x25b   : > { %v1692_v6 = vpop.f32.mrf.mxu2  ;;  %v1712_v5 = vpop.f32.mrf.mxu3 }
 0x25c   : > { %v1736_v15 = vadd.f32 %v1732_v0, %v1692_v6  ;;  %v1737_v63 = vadd.f32 %v1733_v36, %v1712_v5 }
 0x25e   : > { %v1745_v55 = vsub.f32 %v1736_v15, %v1741_v17  ;;  %v1746_v24 = vsub.f32 %v1737_v63, %v1742_v59 }
 0x260   : > { %v1753_v54 = vrot.slane %v1745_v55, 7  ;;  %v1754_v52 = vrot.slane %v1746_v24, 7 }
 0x262   : > { %v1762_v1 = vsel %vm1759_vm9, %v1723_v28, %v1753_v54  ;;  %v1763_v4 = vsel %vm1759_vm9, %v1724_v43, %v1754_v52 }
 0x263   : > { %v1769_v57 = vrot.slane %v1762_v1, 4  ;;  %v1770_v61 = vrot.slane %v1763_v4, 2 }
 0x265   : > { %v1774_v38 = vsel %vm1773_vm11, %v1769_v57, %v1770_v61 }
 0x266   : > { %v1776_v34 = vsel %vm1775_vm12, %v1772_v32, %v1774_v38 }
 0x267   : > { %1778 = vst [vmem:[%s315_s7] sm:$0xff] %v1776_v34 }
 0x268   : > { %2154 = shalt.err (!%p2151_p8)
}
 0x269   : > { %1979 = dma.vmem_to_hbm [thread:$0]  (%p2284_p5), %s1794_s27, 128, %s1796_s28, %s1780_s11  }
 0x26a PF: > { %p1991_p9 = scmp.ge.s32.totalorder %s2193_s10, 2  ;;  %s1807_s22 = sand.u32 1, %s2181_s29  }
 0x26b   : > { %s1808_s24 = scalar_lea.sflag [#allocation4], %s1807_s22 }
 0x26c   : > { %p1986_p10 = pnand %p1991_p9, %p2288_p6 }
 0x26e   : > { %p1987_p11 = pneg %p1986_p10 }
 0x270   : > { %2176 = dma.done.wait (%p1987_p11), %s1808_s24, 128  }
 0x271   : > { %2178 = vsyncadd (%p1987_p11), %s1808_s24, 4294967168  ;;  %p21_p12 = scmp.ge.s32.totalorder %s2271_s12, 4   ;;  %s3283_s29 = smov %s2185_s30 }
 0x272   : > { %s3284_s30 = smov %s2189_s9  ;;  %s3285_s9 = smov %s2282_s15 }
 0x273   : > { %s3286_s10 = smov %s2271_s12  ;;  %23 = sbr.rel (!%p21_p12) target bundleno = 7 (0x7), region = 92 }
 0x278   :  { %1814 = vsyncpa [#allocation4], 1 }
 0x279   :  { %1816 = vsyncpa [#allocation4 + $0x1], 1 }
 0x27a   :  { %1817 = vsyncpa [#allocation5], 1 }
 0x27b   :  { %1819 = vsyncpa [#allocation5 + $0x1], 1 }

</bundles_post_ra>
